<compile_context>
chip_gen: v6e
topology: v6e:2x2x1
jax: 0.10.0
libtpu: 0.0.40
codegen_flags: <defaults>
</compile_context>

<pallas_src>
import functools

import jax
import jax.numpy as jnp
from jax.experimental import pallas as pl
from jax.experimental.pallas import tpu as pltpu

INPUT_SIZE = 1
HIDDEN_SIZES = [128, 128, 128, 128]
OUTPUT_SIZE = 256

_SQRT2 = 1.4142135623730951


def _gelu_exact(x):
    # torch.nn.GELU() default = exact erf-based GELU.
    return 0.5 * x * (1.0 + jax.lax.erf(x / _SQRT2))


def _mlp_kernel(x_ref,
                w1, b1, w2, b2, w3, b3, w4, b4, w5, b5,
                o_ref, *, use_bf16):
    mm_dtype = jnp.bfloat16 if use_bf16 else jnp.float32

    x = x_ref[...].astype(jnp.float32)                                    # (TB, 1)

    # Layer 1 (K = 1): broadcast multiply-add on the VPU instead of an MXU dot.
    h = _gelu_exact(x * w1[...].astype(jnp.float32) + b1[...].astype(jnp.float32))

    def dense(h_in, w_ref, b_ref):
        return jnp.dot(h_in.astype(mm_dtype), w_ref[...].astype(mm_dtype),
                       preferred_element_type=jnp.float32) + b_ref[...].astype(jnp.float32)

    h = _gelu_exact(dense(h, w2, b2))
    h = _gelu_exact(dense(h, w3, b3))
    h = _gelu_exact(dense(h, w4, b4))
    out = dense(h, w5, b5)                                                # (TB, 256)
    o_ref[...] = out.astype(o_ref.dtype)


def init_params(key, input_size=INPUT_SIZE, hidden_sizes=HIDDEN_SIZES,
                output_size=OUTPUT_SIZE, dtype=jnp.float32):
    """Init mimicking torch.nn.Linear (uniform +-1/sqrt(fan_in)).

    Returns a flat list [W1, b1, ..., W5, b5]; W stored as (in, out), b as (1, out).
    """
    sizes = [input_size] + list(hidden_sizes) + [output_size]
    params = []
    for fan_in, fan_out in zip(sizes[:-1], sizes[1:]):
        key, kw, kb = jax.random.split(key, 3)
        bound = 1.0 / (fan_in ** 0.5)
        w = jax.random.uniform(kw, (fan_in, fan_out), dtype, -bound, bound)
        b = jax.random.uniform(kb, (1, fan_out), dtype, -bound, bound)
        params += [w, b]
    return params


def _round_up(v, m):
    return ((v + m - 1) // m) * m


@functools.partial(jax.jit, static_argnames=("batch_tile", "use_bf16"))
def mlp_forward(x, params, batch_tile=512, use_bf16=False):
    """x: (B, input_size) float32 -> (B, output_size) float32."""
    B, in_dim = x.shape
    out_dim = params[-1].shape[-1]

    # ---- batch tile selection -------------------------------------------------
    # Big tiles amortize the per-grid-step pipeline overhead and fill the MXU's
    # M dimension; but keep >= 2 grid steps when the batch allows it so the
    # "parallel" axis can be split across the 2 TensorCores on v7x.
    tb = min(batch_tile, _round_up(B, 8))
    tb = max(8, _round_up(tb, 8))
    if _round_up(B, tb) // tb < 2 and B > 8:
        tb = max(8, _round_up((B + 1) // 2, 8))
    Bp = _round_up(B, tb)
    x_p = jnp.pad(x, ((0, Bp - B), (0, 0)))

    grid = (Bp // tb,)

    x_spec = pl.BlockSpec((tb, in_dim), lambda i: (i, 0))
    # Weights/biases: one full, constant-index block each (fetched once, VMEM-resident).
    param_specs = [pl.BlockSpec(p.shape, lambda i: (0, 0)) for p in params]
    out_spec = pl.BlockSpec((tb, out_dim), lambda i: (i, 0))

    out = pl.pallas_call(
        functools.partial(_mlp_kernel, use_bf16=use_bf16),
        out_shape=jax.ShapeDtypeStruct((Bp, out_dim), x.dtype),
        grid_spec=pltpu.PrefetchScalarGridSpec(
            num_scalar_prefetch=0,
            grid=grid,
            in_specs=[x_spec] + param_specs,
            out_specs=out_spec,
        ),
        compiler_params=pltpu.CompilerParams(
            dimension_semantics=("parallel",),
            # Headroom for large batch tiles; stays under v7x's 64 MiB physical VMEM.
            vmem_limit_bytes=48 * 1024 * 1024,
        ),
    )(x_p, *params)

    return out[:B]


def _reference_forward(x, params):
    # Same math as the kernel's f32 path (layer 1 broadcast == K=1 dot exactly).
    h = x
    for i in range(0, len(params) - 2, 2):
        h = _gelu_exact(h @ params[i] + params[i + 1])
    return h @ params[-2] + params[-1]


if __name__ == "__main__":
    key = jax.random.PRNGKey(0)
    kp, kx = jax.random.split(key)

    params = init_params(kp)

    # Small batch of scalar inputs (input_size = 1), non-multiple of the tile to
    # exercise padding and the >=2-grid-step path.
    batch = 200
    x = jax.random.uniform(kx, (batch, INPUT_SIZE), jnp.float32, -1.0, 1.0)

    # Exact f32 path (default): must match the plain-JAX reference tightly.
    y = jax.block_until_ready(mlp_forward(x, params))
    assert y.shape == (batch, OUTPUT_SIZE), y.shape
    y_ref = _reference_forward(x, params)
    err = float(jnp.max(jnp.abs(y - y_ref)))
    assert err < 1e-4, f"f32 mismatch vs reference: {err}"

    # Optional bf16-MXU-operand path (v6e/v7x speed mode): looser tolerance.
    y_bf16 = jax.block_until_ready(mlp_forward(x, params, use_bf16=True))
    err_bf16 = float(jnp.max(jnp.abs(y_bf16 - y_ref)))
    assert err_bf16 < 5e-2, f"bf16 mismatch vs reference: {err_bf16}"

    print("KERNEL_OK")
</pallas_src>

<mosaic_0001>
module attributes {stable_mosaic.version = 11 : i64} {
  func.func @_mlp_kernel(%arg0: i32, %arg1: memref<104x1xf32, #tpu.memory_space<vmem>>, %arg2: memref<1x128xf32, #tpu.memory_space<vmem>>, %arg3: memref<1x128xf32, #tpu.memory_space<vmem>>, %arg4: memref<128x128xf32, #tpu.memory_space<vmem>>, %arg5: memref<1x128xf32, #tpu.memory_space<vmem>>, %arg6: memref<128x128xf32, #tpu.memory_space<vmem>>, %arg7: memref<1x128xf32, #tpu.memory_space<vmem>>, %arg8: memref<128x128xf32, #tpu.memory_space<vmem>>, %arg9: memref<1x128xf32, #tpu.memory_space<vmem>>, %arg10: memref<128x256xf32, #tpu.memory_space<vmem>>, %arg11: memref<1x256xf32, #tpu.memory_space<vmem>>, %arg12: memref<104x256xf32, #tpu.memory_space<vmem>>) attributes {dimension_semantics = [#tpu.dimension_semantics<parallel>], iteration_bounds = array<i64: 2>, scalar_prefetch = 0 : i64, scratch_operands = 0 : i64, tpu.core_type = #tpu.core_type<tc>, window_params = [{transform_indices = @transform_0, window_bounds = array<i64: 104, 1>}, {pipeline_mode = #tpu.pipeline_mode<synchronous>, transform_indices = @transform_1, window_bounds = array<i64: 1, 128>}, {pipeline_mode = #tpu.pipeline_mode<synchronous>, transform_indices = @transform_2, window_bounds = array<i64: 1, 128>}, {pipeline_mode = #tpu.pipeline_mode<synchronous>, transform_indices = @transform_3, window_bounds = array<i64: 128, 128>}, {pipeline_mode = #tpu.pipeline_mode<synchronous>, transform_indices = @transform_4, window_bounds = array<i64: 1, 128>}, {pipeline_mode = #tpu.pipeline_mode<synchronous>, transform_indices = @transform_5, window_bounds = array<i64: 128, 128>}, {pipeline_mode = #tpu.pipeline_mode<synchronous>, transform_indices = @transform_6, window_bounds = array<i64: 1, 128>}, {pipeline_mode = #tpu.pipeline_mode<synchronous>, transform_indices = @transform_7, window_bounds = array<i64: 128, 128>}, {pipeline_mode = #tpu.pipeline_mode<synchronous>, transform_indices = @transform_8, window_bounds = array<i64: 1, 128>}, {pipeline_mode = #tpu.pipeline_mode<synchronous>, transform_indices = @transform_9, window_bounds = array<i64: 128, 256>}, {pipeline_mode = #tpu.pipeline_mode<synchronous>, transform_indices = @transform_10, window_bounds = array<i64: 1, 256>}, {transform_indices = @transform_11, window_bounds = array<i64: 104, 256>}]} {
    %c0 = arith.constant 0 : index
    %c0_0 = arith.constant 0 : index
    %0 = vector.load %arg1[%c0, %c0_0] : memref<104x1xf32, #tpu.memory_space<vmem>>, vector<104x1xf32>
    %c0_1 = arith.constant 0 : index
    %c0_2 = arith.constant 0 : index
    %1 = vector.load %arg2[%c0_1, %c0_2] : memref<1x128xf32, #tpu.memory_space<vmem>>, vector<1x128xf32>
    %2 = vector.broadcast %0 : vector<104x1xf32> to vector<104x128xf32>
    %3 = vector.broadcast %1 : vector<1x128xf32> to vector<104x128xf32>
    %4 = arith.mulf %2, %3 : vector<104x128xf32>
    %c0_3 = arith.constant 0 : index
    %c0_4 = arith.constant 0 : index
    %5 = vector.load %arg3[%c0_3, %c0_4] : memref<1x128xf32, #tpu.memory_space<vmem>>, vector<1x128xf32>
    %6 = vector.broadcast %5 : vector<1x128xf32> to vector<104x128xf32>
    %7 = arith.addf %4, %6 : vector<104x128xf32>
    %cst = arith.constant 5.000000e-01 : f32
    %8 = vector.broadcast %cst : f32 to vector<104x128xf32>
    %9 = arith.mulf %8, %7 : vector<104x128xf32>
    %cst_5 = arith.constant 1.41421354 : f32
    %10 = vector.broadcast %cst_5 : f32 to vector<104x128xf32>
    %11 = arith.divf %7, %10 : vector<104x128xf32>
    %12 = math.erf %11 : vector<104x128xf32>
    %cst_6 = arith.constant 1.000000e+00 : f32
    %13 = vector.broadcast %cst_6 : f32 to vector<104x128xf32>
    %14 = arith.addf %13, %12 : vector<104x128xf32>
    %15 = arith.mulf %9, %14 : vector<104x128xf32>
    %c0_7 = arith.constant 0 : index
    %c0_8 = arith.constant 0 : index
    %16 = vector.load %arg4[%c0_7, %c0_8] : memref<128x128xf32, #tpu.memory_space<vmem>>, vector<128x128xf32>
    %cst_9 = arith.constant dense<0.000000e+00> : vector<104x128xf32>
    %17 = tpu.matmul %15, %16, %cst_9 {dimension_numbers = #tpu.dot_dimension_numbers<[1], [0], [0], [1], [0, 0, 1, 1], [], []>} : vector<104x128xf32>, vector<128x128xf32>, vector<104x128xf32> -> vector<104x128xf32>
    %c0_10 = arith.constant 0 : index
    %c0_11 = arith.constant 0 : index
    %18 = vector.load %arg5[%c0_10, %c0_11] : memref<1x128xf32, #tpu.memory_space<vmem>>, vector<1x128xf32>
    %19 = vector.broadcast %18 : vector<1x128xf32> to vector<104x128xf32>
    %20 = arith.addf %17, %19 : vector<104x128xf32>
    %cst_12 = arith.constant 5.000000e-01 : f32
    %21 = vector.broadcast %cst_12 : f32 to vector<104x128xf32>
    %22 = arith.mulf %21, %20 : vector<104x128xf32>
    %cst_13 = arith.constant 1.41421354 : f32
    %23 = vector.broadcast %cst_13 : f32 to vector<104x128xf32>
    %24 = arith.divf %20, %23 : vector<104x128xf32>
    %25 = math.erf %24 : vector<104x128xf32>
    %cst_14 = arith.constant 1.000000e+00 : f32
    %26 = vector.broadcast %cst_14 : f32 to vector<104x128xf32>
    %27 = arith.addf %26, %25 : vector<104x128xf32>
    %28 = arith.mulf %22, %27 : vector<104x128xf32>
    %c0_15 = arith.constant 0 : index
    %c0_16 = arith.constant 0 : index
    %29 = vector.load %arg6[%c0_15, %c0_16] : memref<128x128xf32, #tpu.memory_space<vmem>>, vector<128x128xf32>
    %cst_17 = arith.constant dense<0.000000e+00> : vector<104x128xf32>
    %30 = tpu.matmul %28, %29, %cst_17 {dimension_numbers = #tpu.dot_dimension_numbers<[1], [0], [0], [1], [0, 0, 1, 1], [], []>} : vector<104x128xf32>, vector<128x128xf32>, vector<104x128xf32> -> vector<104x128xf32>
    %c0_18 = arith.constant 0 : index
    %c0_19 = arith.constant 0 : index
    %31 = vector.load %arg7[%c0_18, %c0_19] : memref<1x128xf32, #tpu.memory_space<vmem>>, vector<1x128xf32>
    %32 = vector.broadcast %31 : vector<1x128xf32> to vector<104x128xf32>
    %33 = arith.addf %30, %32 : vector<104x128xf32>
    %cst_20 = arith.constant 5.000000e-01 : f32
    %34 = vector.broadcast %cst_20 : f32 to vector<104x128xf32>
    %35 = arith.mulf %34, %33 : vector<104x128xf32>
    %cst_21 = arith.constant 1.41421354 : f32
    %36 = vector.broadcast %cst_21 : f32 to vector<104x128xf32>
    %37 = arith.divf %33, %36 : vector<104x128xf32>
    %38 = math.erf %37 : vector<104x128xf32>
    %cst_22 = arith.constant 1.000000e+00 : f32
    %39 = vector.broadcast %cst_22 : f32 to vector<104x128xf32>
    %40 = arith.addf %39, %38 : vector<104x128xf32>
    %41 = arith.mulf %35, %40 : vector<104x128xf32>
    %c0_23 = arith.constant 0 : index
    %c0_24 = arith.constant 0 : index
    %42 = vector.load %arg8[%c0_23, %c0_24] : memref<128x128xf32, #tpu.memory_space<vmem>>, vector<128x128xf32>
    %cst_25 = arith.constant dense<0.000000e+00> : vector<104x128xf32>
    %43 = tpu.matmul %41, %42, %cst_25 {dimension_numbers = #tpu.dot_dimension_numbers<[1], [0], [0], [1], [0, 0, 1, 1], [], []>} : vector<104x128xf32>, vector<128x128xf32>, vector<104x128xf32> -> vector<104x128xf32>
    %c0_26 = arith.constant 0 : index
    %c0_27 = arith.constant 0 : index
    %44 = vector.load %arg9[%c0_26, %c0_27] : memref<1x128xf32, #tpu.memory_space<vmem>>, vector<1x128xf32>
    %45 = vector.broadcast %44 : vector<1x128xf32> to vector<104x128xf32>
    %46 = arith.addf %43, %45 : vector<104x128xf32>
    %cst_28 = arith.constant 5.000000e-01 : f32
    %47 = vector.broadcast %cst_28 : f32 to vector<104x128xf32>
    %48 = arith.mulf %47, %46 : vector<104x128xf32>
    %cst_29 = arith.constant 1.41421354 : f32
    %49 = vector.broadcast %cst_29 : f32 to vector<104x128xf32>
    %50 = arith.divf %46, %49 : vector<104x128xf32>
    %51 = math.erf %50 : vector<104x128xf32>
    %cst_30 = arith.constant 1.000000e+00 : f32
    %52 = vector.broadcast %cst_30 : f32 to vector<104x128xf32>
    %53 = arith.addf %52, %51 : vector<104x128xf32>
    %54 = arith.mulf %48, %53 : vector<104x128xf32>
    %c0_31 = arith.constant 0 : index
    %c0_32 = arith.constant 0 : index
    %55 = vector.load %arg10[%c0_31, %c0_32] : memref<128x256xf32, #tpu.memory_space<vmem>>, vector<128x256xf32>
    %cst_33 = arith.constant dense<0.000000e+00> : vector<104x256xf32>
    %56 = tpu.matmul %54, %55, %cst_33 {dimension_numbers = #tpu.dot_dimension_numbers<[1], [0], [0], [1], [0, 0, 1, 1], [], []>} : vector<104x128xf32>, vector<128x256xf32>, vector<104x256xf32> -> vector<104x256xf32>
    %c0_34 = arith.constant 0 : index
    %c0_35 = arith.constant 0 : index
    %57 = vector.load %arg11[%c0_34, %c0_35] : memref<1x256xf32, #tpu.memory_space<vmem>>, vector<1x256xf32>
    %58 = vector.broadcast %57 : vector<1x256xf32> to vector<104x256xf32>
    %59 = arith.addf %56, %58 : vector<104x256xf32>
    %c0_36 = arith.constant 0 : index
    %c0_37 = arith.constant 0 : index
    %60 = vector.load %arg12[%c0_36, %c0_37] : memref<104x256xf32, #tpu.memory_space<vmem>>, vector<104x256xf32>
    tpu.vector_store %arg12[%c0_36, %c0_37], %59 {strides = array<i32>} : memref<104x256xf32, #tpu.memory_space<vmem>>, vector<104x256xf32>,
    return
  }
  func.func @transform_0(%arg0: i32) -> (i32, i32) {
    %c0_i32 = arith.constant 0 : i32
    %c0_i32_0 = arith.constant 0 : i32
    return %arg0, %c0_i32 : i32, i32
  }
  func.func @transform_1(%arg0: i32) -> (i32, i32) {
    %c0_i32 = arith.constant 0 : i32
    %c0_i32_0 = arith.constant 0 : i32
    %c0_i32_1 = arith.constant 0 : i32
    return %c0_i32, %c0_i32_0 : i32, i32
  }
  func.func @transform_2(%arg0: i32) -> (i32, i32) {
    %c0_i32 = arith.constant 0 : i32
    %c0_i32_0 = arith.constant 0 : i32
    %c0_i32_1 = arith.constant 0 : i32
    return %c0_i32, %c0_i32_0 : i32, i32
  }
  func.func @transform_3(%arg0: i32) -> (i32, i32) {
    %c0_i32 = arith.constant 0 : i32
    %c0_i32_0 = arith.constant 0 : i32
    %c0_i32_1 = arith.constant 0 : i32
    return %c0_i32, %c0_i32_0 : i32, i32
  }
  func.func @transform_4(%arg0: i32) -> (i32, i32) {
    %c0_i32 = arith.constant 0 : i32
    %c0_i32_0 = arith.constant 0 : i32
    %c0_i32_1 = arith.constant 0 : i32
    return %c0_i32, %c0_i32_0 : i32, i32
  }
  func.func @transform_5(%arg0: i32) -> (i32, i32) {
    %c0_i32 = arith.constant 0 : i32
    %c0_i32_0 = arith.constant 0 : i32
    %c0_i32_1 = arith.constant 0 : i32
    return %c0_i32, %c0_i32_0 : i32, i32
  }
  func.func @transform_6(%arg0: i32) -> (i32, i32) {
    %c0_i32 = arith.constant 0 : i32
    %c0_i32_0 = arith.constant 0 : i32
    %c0_i32_1 = arith.constant 0 : i32
    return %c0_i32, %c0_i32_0 : i32, i32
  }
  func.func @transform_7(%arg0: i32) -> (i32, i32) {
    %c0_i32 = arith.constant 0 : i32
    %c0_i32_0 = arith.constant 0 : i32
    %c0_i32_1 = arith.constant 0 : i32
    return %c0_i32, %c0_i32_0 : i32, i32
  }
  func.func @transform_8(%arg0: i32) -> (i32, i32) {
    %c0_i32 = arith.constant 0 : i32
    %c0_i32_0 = arith.constant 0 : i32
    %c0_i32_1 = arith.constant 0 : i32
    return %c0_i32, %c0_i32_0 : i32, i32
  }
  func.func @transform_9(%arg0: i32) -> (i32, i32) {
    %c0_i32 = arith.constant 0 : i32
    %c0_i32_0 = arith.constant 0 : i32
    %c0_i32_1 = arith.constant 0 : i32
    return %c0_i32, %c0_i32_0 : i32, i32
  }
  func.func @transform_10(%arg0: i32) -> (i32, i32) {
    %c0_i32 = arith.constant 0 : i32
    %c0_i32_0 = arith.constant 0 : i32
    %c0_i32_1 = arith.constant 0 : i32
    return %c0_i32, %c0_i32_0 : i32, i32
  }
  func.func @transform_11(%arg0: i32) -> (i32, i32) {
    %c0_i32 = arith.constant 0 : i32
    %c0_i32_0 = arith.constant 0 : i32
    return %arg0, %c0_i32 : i32, i32
  }
}

</mosaic_0001>

<bundles_post_ra>
// kernel: mlp_forward.1
= control target key start
LH: loop header
LB: loop body
LE: loop exit
PB: predicated region body
PF: predicated region fallthrough
CT: control target
= control target key end

     0   :  { %16 = vsyncpa [#allocation3], 0  ;;  %s2080_s17 = smov 0   ;;  %s2631_s0 = inlined_call_operand.vmem [shape: f32[208,1], index: 0, kind: input, shape index: {}]   ;;  %s2632_s1 = inlined_call_operand.vmem [shape: f32[1,128], index: 1, kind: input, shape index: {}]   ;;  %s2633_s2 = inlined_call_operand.vmem [shape: f32[1,128], index: 2, kind: input, shape index: {}]   ;;  %s2634_s3 = inlined_call_operand.vmem [shape: f32[128,128], index: 3, kind: input, shape index: {}]   ;;  %s2635_s4 = inlined_call_operand.vmem [shape: f32[1,128], index: 4, kind: input, shape index: {}]   ;;  %s2636_s5 = inlined_call_operand.vmem [shape: f32[128,128], index: 5, kind: input, shape index: {}]   ;;  %s2637_s6 = inlined_call_operand.vmem [shape: f32[1,128], index: 6, kind: input, shape index: {}]   ;;  %s2638_s7 = inlined_call_operand.hbm [shape: f32[128,128], index: 7, kind: input, shape index: {}]   ;;  %s2639_s8 = inlined_call_operand.vmem [shape: f32[1,128], index: 8, kind: input, shape index: {}]   ;;  %s2640_s9 = inlined_call_operand.vmem [shape: f32[128,256], index: 9, kind: input, shape index: {}]   ;;  %s2641_s10 = inlined_call_operand.vmem [shape: f32[1,256], index: 10, kind: input, shape index: {}]   ;;  %s2642_s11 = inlined_call_operand.vmem [shape: f32[208,256], index: 11, kind: output, shape index: {}]  }
   0x1 LB: > { %s1528_s18 = sadd.s32 4294967295, %s2012_s17   ;;  %p1530_p0 = scmp.ge.s32.totalorder %s2012_s17, 1  ;;  %s2012_s17 = sphi %s2080_s17, %s22_s17  }
   0x2   : > { %p289_p1 = scmp.lt.s32.totalorder %s2012_s17, 3  ;;  %s2014_s19 = smov [#allocation2]  }
   0x3   : > { %s319_s20 = sshll.u32 %s2014_s19, 4  ;;  %p2092_p3 = scmp.eq.s32.totalorder %s1528_s18, 0  ;;  %s320_s20 = int_to_ptr.vmem [resolvable:$true] %s319_s20 }
   0x4   : > { %p2088_p2 = pnand %p1530_p0, %p289_p1  ;;  %s1987_s23 = scalar_lea.vmem %s320_s20, 2048 }
   0x5   : > { %p1988_p7 = scmp.ne.s32.totalorder %s320_s20, %s1987_s23  ;;  %p1995_p10 = scmp.lt.s32.totalorder %s320_s20, %s320_s20 }
   0x6   : > { %p1850_p4 = pneg %p2088_p2  ;;  %p1996_p11 = scmp.lt.s32.totalorder %s1987_s23, %s1987_s23 }
   0x8   : > { %p1851_p5 = pnand %p2092_p3, %p1850_p4  ;;  %p1997_p12 = por %p1996_p11, %p1995_p10 }
   0xa   : > { %p1978_p6 = pneg %p1851_p5 }
   0xc   : > { %p1990_p8 = pnand %p1988_p7, %p1978_p6 }
   0xe   : > { %p1991_p9 = pneg %p1990_p8 }
  0x10   : > { %p1998_p13 = pnand %p1997_p12, %p1991_p9 }
  0x12   : > { %2001 = shalt.err (!%p1998_p13)
}
  0x13   : > { %s2015_s24 = smov 128   ;;  %s2016_s25 = smov 8  }
  0x14   : > { %1853 = dma.hbm_to_vmem [thread:$0]  (!%p1851_p5), %s2638_s7, 2048, %s320_s20, [#allocation3], %s2015_s24, %s2015_s24, %s2016_s25  }
  0x15   : > { %353 = sbr.rel (%p2088_p2) target bundleno = 1074 (0x432), region = 64 }
  0x1a   : > { %2007 = dma.done.wait (%p2092_p3), [#allocation3], 2048  }
  0x1b   : > { %2009 = vsyncadd (%p2092_p3), [#allocation3], 4294965248  ;;  %s394_s28 = smul.u32 13, %s1528_s18  ;;  %v2017_v0 = vmov 0   ;;  %v2018_v1 = vmov 0.0   ;;  %v606_v2 = vld [vmem:[%s2634_s3 + $0x78] sm:$0xff] }
  0x1c   : > { %1871 = vset.pattern.permute.xlu1 %v2017_v0  ;;  %1870 = vset.pattern.permute.xlu0 %v2017_v0  ;;  %v605_v5 = vld [vmem:[%s2634_s3 + $0x70] sm:$0xff]  ;;  %v604_v8 = vld [vmem:[%s2634_s3 + $0x68] sm:$0xff]  ;;  %v603_v9 = vld [vmem:[%s2634_s3 + $0x60] sm:$0xff]  ;;  %vm2019_vm0 = vmmov 0  }
  0x1d   : > { %p395_p0 = scmp.lt.s32.totalorder %s394_s28, 25  ;;  %1633 = vmatprep.subr.mxu0 %v2018_v1  ;;  %1704 = vmatprep.subr.mxu1 %v2018_v1  ;;  %v602_v12 = vld [vmem:[%s2634_s3 + $0x58] sm:$0xff]  ;;  %v601_v15 = vld [vmem:[%s2634_s3 + $0x50] sm:$0xff]  ;;  %v600_v16 = vld [vmem:[%s2634_s3 + $0x48] sm:$0xff] }
  0x1e   : > { %1634 = vmatpush3.msra.mxu0 %v606_v2  ;;  %v599_v19 = vld [vmem:[%s2634_s3 + $0x40] sm:$0xff]  ;;  %v598_v22 = vld [vmem:[%s2634_s3 + $0x38] sm:$0xff]  ;;  %v597_v23 = vld [vmem:[%s2634_s3 + $0x30] sm:$0xff]  ;;  %1665 = vmatprep.mubr.msk.f32.mxu0 %vm2019_vm0, %v2018_v1 }
  0x1f   : > { %s2646_s28 = smov (!%p395_p0, %s394_s28), 25  ;;  %1635 = vmatprep.subr.mxu0 %v2018_v1  ;;  %v596_v25 = vld [vmem:[%s2634_s3 + $0x28] sm:$0xff]  ;;  %1736 = vmatprep.mubr.msk.f32.mxu1 %vm2019_vm0, %v2018_v1  ;;  %v595_v26 = vld [vmem:[%s2634_s3 + $0x20] sm:$0xff]  ;;  %v594_v27 = vld [vmem:[%s2634_s3 + $0x18] sm:$0xff] }
  0x20   : > { %s1535_s29 = sshll.u32 %s2646_s28, 3  ;;  %1636 = vmatpush3.msra.mxu0 %v605_v5  ;;  %v593_v28 = vld [vmem:[%s2634_s3 + $0x10] sm:$0xff]  ;;  %v592_v29 = vld [vmem:[%s2634_s3 + $0x8] sm:$0xff]  ;;  %v591_v30 = vld [vmem:[%s2634_s3] sm:$0xff]  ;;  %s1545_s20 = sshll.u32 %s2646_s28, 4 }
  0x21   : > { %s2117_s13 = scalar_lea.vmem %s2631_s0, %s1535_s29  ;;  %1637 = vmatprep.subr.mxu0 %v2018_v1  ;;  %v824_v31 = vld [vmem:[%s2636_s5 + $0x78] sm:$0xff]  ;;  %v823_v32 = vld [vmem:[%s2636_s5 + $0x70] sm:$0xff]  ;;  %v822_v33 = vld [vmem:[%s2636_s5 + $0x68] sm:$0xff]  ;;  %s2574_s22 = scalar_lea.vmem %s2642_s11, %s1545_s20 }
  0x22   : > { %v409_v3 = vld [vmem:[%s2117_s13 + $0x10] sm:$0xff]  ;;  %v407_v4 = vld [vmem:[%s2117_s13] sm:$0xff]  ;;  %v410_v6 = vld [vmem:[%s2117_s13 + $0x18] sm:$0xff]  ;;  %1638 = vmatpush3.msra.mxu0 %v604_v8  ;;  %1705 = vmatpush3.msra.mxu1 %v824_v31 }
  0x23   : > { %433 = vperm.xlu1 %1871, %v409_v3   ;;  %423 = vperm.xlu0 %1870, %v407_v4   ;;  %v408_v7 = vld [vmem:[%s2117_s13 + $0x8] sm:$0xff]  ;;  %v411_v11 = vld [vmem:[%s2117_s13 + $0x20] sm:$0xff]  ;;  %v414_v13 = vld [vmem:[%s2117_s13 + $0x38] sm:$0xff] }
  0x24   : > { %v412_v10 = vld [vmem:[%s2117_s13 + $0x28] sm:$0xff]  ;;  %1639 = vmatprep.subr.mxu0 %v2018_v1  ;;  %v413_v14 = vld [vmem:[%s2117_s13 + $0x30] sm:$0xff]  ;;  %v415_v18 = vld [vmem:[%s2117_s13 + $0x40] sm:$0xff]  ;;  %1706 = vmatprep.subr.mxu1 %v2018_v1 }
  0x25   : > { %1640 = vmatpush3.msra.mxu0 %v603_v9  ;;  %v416_v17 = vld [vmem:[%s2117_s13 + $0x48] sm:$0xff]  ;;  %v418_v20 = vld [vmem:[%s2117_s13 + $0x58] sm:$0xff]  ;;  %v417_v21 = vld [vmem:[%s2117_s13 + $0x50] sm:$0xff]  ;;  %1707 = vmatpush3.msra.mxu1 %v823_v32 }
  0x26   : > { %1641 = vmatprep.subr.mxu0 %v2018_v1  ;;  %v419_v24 = vld [vmem:[%s2117_s13 + $0x60] sm:$0xff]  ;;  %1708 = vmatprep.subr.mxu1 %v2018_v1 }
  0x27   : > { %438 = vperm.xlu1 %1871, %v410_v6   ;;  %428 = vperm.xlu0 %1870, %v408_v7   ;;  %v821_v34 = vld [vmem:[%s2636_s5 + $0x60] sm:$0xff] }
  0x28   : > { %1642 = vmatpush3.msra.mxu0 %v602_v12  ;;  %1709 = vmatpush3.msra.mxu1 %v822_v33  ;;  %v2219_v35 = vld [vmem:[%s2632_s1] ss:$0 sm:$0xff] }
  0x29   : > { %1643 = vmatprep.subr.mxu0 %v2018_v1  ;;  %1710 = vmatprep.subr.mxu1 %v2018_v1  ;;  %v2224_v36 = vld [vmem:[%s2633_s2] ss:$0 sm:$0xff] }
  0x2a   : > { %1644 = vmatpush3.msra.mxu0 %v601_v15  ;;  %1711 = vmatpush3.msra.mxu1 %v821_v34 }
  0x2b   : > { %448 = vperm.xlu1 %1871, %v412_v10   ;;  %443 = vperm.xlu0 %1870, %v411_v11  }
  0x2c   : > { %1645 = vmatprep.subr.mxu0 %v2018_v1  ;;  %1712 = vmatprep.subr.mxu1 %v2018_v1 }
  0x2d   : > { %1646 = vmatpush3.msra.mxu0 %v600_v16 }
  0x2e   : > { %1647 = vmatprep.subr.mxu0 %v2018_v1 }
  0x2f   : > { %458 = vperm.xlu1 %1871, %v414_v13   ;;  %453 = vperm.xlu0 %1870, %v413_v14  }
  0x30   : > { %1648 = vmatpush3.msra.mxu0 %v599_v19 }
  0x31   : > { %1649 = vmatprep.subr.mxu0 %v2018_v1 }
  0x32   : > { %1650 = vmatpush3.msra.mxu0 %v598_v22 }
  0x33   : > { %468 = vperm.xlu1 %1871, %v416_v17   ;;  %463 = vperm.xlu0 %1870, %v415_v18  }
  0x34   : > { %1651 = vmatprep.subr.mxu0 %v2018_v1 }
  0x35   : > { %1652 = vmatpush3.msra.mxu0 %v597_v23 }
  0x36   : > { %1653 = vmatprep.subr.mxu0 %v2018_v1 }
  0x37   : > { %478 = vperm.xlu1 %1871, %v418_v20   ;;  %473 = vperm.xlu0 %1870, %v417_v21  }
  0x38   : > { %1654 = vmatpush3.msra.mxu0 %v596_v25 }
  0x39   : > { %1655 = vmatprep.subr.mxu0 %v2018_v1 }
  0x3a   : > { %1656 = vmatpush3.msra.mxu0 %v595_v26 }
  0x3b   : > { %483 = vperm.xlu0 %1870, %v419_v24   ;;  %1657 = vmatprep.subr.mxu0 %v2018_v1 }
  0x3c   : > { %1658 = vmatpush3.msra.mxu0 %v594_v27 }
  0x3d   : > { %1659 = vmatprep.subr.mxu0 %v2018_v1 }
  0x3e   : > { %1660 = vmatpush3.msra.mxu0 %v593_v28 }
  0x3f   : > { %1661 = vmatprep.subr.mxu0 %v2018_v1 }
  0x40   : > { %1662 = vmatpush3.msra.mxu0 %v592_v29 }
  0x41   : > { %1663 = vmatprep.subr.mxu0 %v2018_v1 }
  0x42   : > { %1664 = vmatpush3.msra.mxu0 %v591_v30 }
  0x43   : > { %1775 = vmatprep.subr.mxu0 %v2018_v1 }
  0x9e   : > { %v434_v37 = vpop.permute.xlu1 %433  ;;  %v424_v38 = vpop.permute.xlu0 %423 }
  0x9f   : > { %v494_v39 = vmul.f32 %v2219_v35, %v434_v37  ;;  %v492_v40 = vmul.f32 %v2219_v35, %v424_v38 }
  0xa1   : > { %v512_v41 = vadd.f32 %v2224_v36, %v492_v40  ;;  %v514_v42 = vadd.f32 %v2224_v36, %v494_v39 }
  0xa2   : > { %v439_v43 = vpop.permute.xlu1 %438  ;;  %v429_v44 = vpop.permute.xlu0 %428 }
  0xa3   : > { %v539_v45 = vmul.f32 0.70710677, %v512_v41  ;;  %v495_v46 = vmul.f32 %v2219_v35, %v439_v43  ;;  %v493_v47 = vmul.f32 %v2219_v35, %v429_v44  ;;  %v541_v48 = vmul.f32 0.70710677, %v514_v42 }
  0xa4   : > { %v525_v4 = vmul.f32 0.5, %v512_v41  ;;  %v527_v23 = vmul.f32 0.5, %v514_v42 }
  0xa5   : > { %1872 = verf.f32 %v539_v45  ;;  %v513_v49 = vadd.f32 %v2224_v36, %v493_v47  ;;  %v515_v51 = vadd.f32 %v2224_v36, %v495_v46 }
  0xa6   : > { %v444_v50 = vpop.permute.xlu0 %443  ;;  %v449_v54 = vpop.permute.xlu1 %448  ;;  %1874 = verf.f32 %v541_v48 }
  0xa7   : > { %v496_v52 = vmul.f32 %v2219_v35, %v444_v50  ;;  %v540_v53 = vmul.f32 0.70710677, %v513_v49  ;;  %v542_v55 = vmul.f32 0.70710677, %v515_v51  ;;  %v497_v56 = vmul.f32 %v2219_v35, %v449_v54 }
  0xa8   : > { %v526_v14 = vmul.f32 0.5, %v513_v49  ;;  %v528_v31 = vmul.f32 0.5, %v515_v51 }
  0xa9   : > { %1876 = verf.f32 %v540_v53  ;;  %v516_v57 = vadd.f32 %v2224_v36, %v496_v52  ;;  %v2238_v59 = vadd.f32 %v2224_v36, %v497_v56 }
  0xaa   : > { %v454_v58 = vpop.permute.xlu0 %453  ;;  %1878 = verf.f32 %v542_v55  ;;  %v459_v61 = vpop.permute.xlu1 %458 }
  0xab   : > { %v543_v60 = vmul.f32 0.70710677, %v516_v57  ;;  %v498_v62 = vmul.f32 %v2219_v35, %v454_v58  ;;  %v499_v63 = vmul.f32 %v2219_v35, %v459_v61  ;;  %v544_v2 = vmul.f32 0.70710677, %v2238_v59 }
  0xac   : > { %v529_v41 = vmul.f32 0.5, %v516_v57  ;;  %v530_v48 = vmul.f32 0.5, %v2238_v59 }
  0xad   : > { %1880 = verf.f32 %v543_v60  ;;  %v2244_v3 = vadd.f32 %v2224_v36, %v498_v62  ;;  %v2247_v7 = vadd.f32 %v2224_v36, %v499_v63 }
  0xae   : > { %v464_v5 = vpop.permute.xlu0 %463  ;;  %1882 = verf.f32 %v544_v2  ;;  %v469_v11 = vpop.permute.xlu1 %468 }
  0xaf   : > { %v545_v10 = vmul.f32 0.70710677, %v2244_v3  ;;  %v500_v12 = vmul.f32 %v2219_v35, %v464_v5  ;;  %v546_v16 = vmul.f32 0.70710677, %v2247_v7  ;;  %v501_v17 = vmul.f32 %v2219_v35, %v469_v11 }
  0xb0   : > { %v531_v54 = vmul.f32 0.5, %v2244_v3  ;;  %v532_v58 = vmul.f32 0.5, %v2247_v7 }
  0xb1   : > { %1884 = verf.f32 %v545_v10  ;;  %v520_v18 = vadd.f32 %v2224_v36, %v500_v12  ;;  %v521_v24 = vadd.f32 %v2224_v36, %v501_v17  ;;  %v818_v17 = vld [vmem:[%s2636_s5 + $0x48] sm:$0xff] }
  0xb2   : > { %v1873_v0 = vpop.eup %1872  ;;  %v474_v22 = vpop.permute.xlu0 %473  ;;  %1886 = verf.f32 %v546_v16  ;;  %v819_v16 = vld [vmem:[%s2636_s5 + $0x50] sm:$0xff] }
  0xb3   : > { %v565_v6 = vadd.f32 1.0, %v1873_v0  ;;  %v1875_v9 = vpop.eup %1874  ;;  %v547_v25 = vmul.f32 0.70710677, %v520_v18  ;;  %v479_v26 = vpop.permute.xlu1 %478  ;;  %v502_v27 = vmul.f32 %v2219_v35, %v474_v22  ;;  %v548_v32 = vmul.f32 0.70710677, %v521_v24  ;;  %v813_v22 = vld [vmem:[%s2636_s5 + $0x20] sm:$0xff] }
  0xb4   : > { %v567_v20 = vadd.f32 1.0, %v1875_v9  ;;  %v503_v33 = vmul.f32 %v2219_v35, %v479_v26  ;;  %v533_v61 = vmul.f32 0.5, %v520_v18  ;;  %v534_v2 = vmul.f32 0.5, %v521_v24  ;;  %v817_v18 = vld [vmem:[%s2636_s5 + $0x40] sm:$0xff]  ;;  %v811_v24 = vld [vmem:[%s2636_s5 + $0x10] sm:$0xff] }
  0xb5   : > { %v578_v8 = vmul.f32 %v565_v6, %v525_v4  ;;  %1888 = verf.f32 %v547_v25  ;;  %v522_v34 = vadd.f32 %v2224_v36, %v502_v27  ;;  %v810_v25 = vld [vmem:[%s2636_s5 + $0x8] sm:$0xff]  ;;  %v809_v26 = vld [vmem:[%s2636_s5] sm:$0xff]  ;;  %v1042_v27 = vld [vmem:[#allocation2 + $0x78] sm:$0xff] }
  0xb6   : > { %v1877_v13 = vpop.eup %1876  ;;  %v580_v28 = vmul.f32 %v567_v20, %v527_v23  ;;  %v484_v40 = vpop.permute.xlu0 %483  ;;  %1890 = verf.f32 %v548_v32  ;;  %v523_v42 = vadd.f32 %v2224_v36, %v503_v33  ;;  %v815_v20 = vld [vmem:[%s2636_s5 + $0x30] sm:$0xff]  ;;  %v812_v23 = vld [vmem:[%s2636_s5 + $0x18] sm:$0xff]  ;;  %v1036_v33 = vld [vmem:[#allocation2 + $0x48] sm:$0xff] }
  0xb7   : > { %1666 = vmatmul.mubr.f32.vlgmr.msra.gmra.mxu0 %v578_v8  ;;  %v566_v15 = vadd.f32 1.0, %v1877_v13  ;;  %v1879_v21 = vpop.eup %1878  ;;  %v549_v43 = vmul.f32 0.70710677, %v522_v34  ;;  %v504_v44 = vmul.f32 %v2219_v35, %v484_v40  ;;  %v535_v6 = vmul.f32 0.5, %v522_v34  ;;  %v1037_v32 = vld [vmem:[#allocation2 + $0x50] sm:$0xff]  ;;  %v1035_v34 = vld [vmem:[#allocation2 + $0x40] sm:$0xff] }
  0xb8   : > { %1668 = vmatprep.mubr.msk.f32.mxu0 %vm2019_vm0, %v2018_v1  ;;  %v568_v29 = vadd.f32 1.0, %v1879_v21  ;;  %v550_v49 = vmul.f32 0.70710677, %v523_v42  ;;  %v536_v10 = vmul.f32 0.5, %v523_v42  ;;  %v814_v21 = vld [vmem:[%s2636_s5 + $0x28] sm:$0xff]  ;;  %1776 = vmatpush3.msra.mxu0 %v1042_v27 }
  0xb9   : > { %v579_v19 = vmul.f32 %v566_v15, %v526_v14  ;;  %1892 = verf.f32 %v549_v43  ;;  %v524_v51 = vadd.f32 %v2224_v36, %v504_v44  ;;  %v820_v15 = vld [vmem:[%s2636_s5 + $0x58] sm:$0xff]  ;;  %1777 = vmatprep.subr.mxu0 %v2018_v1 }
  0xba   : > { %v1881_v30 = vpop.eup %1880  ;;  %v581_v37 = vmul.f32 %v568_v29, %v528_v31  ;;  %1894 = verf.f32 %v550_v49  ;;  %1713 = vmatpush3.msra.mxu1 %v820_v15  ;;  %v1040_v29 = vld [vmem:[#allocation2 + $0x68] sm:$0xff]  ;;  %v1038_v31 = vld [vmem:[#allocation2 + $0x58] sm:$0xff] }
  0xbb   : > { %1669 = vmatmul.mubr.f32.gmra.mxu0 %v579_v19  ;;  %v569_v38 = vadd.f32 1.0, %v1881_v30  ;;  %v1883_v39 = vpop.eup %1882  ;;  %v551_v35 = vmul.f32 0.70710677, %v524_v51  ;;  %v537_v13 = vmul.f32 0.5, %v524_v51  ;;  %1714 = vmatprep.subr.mxu1 %v2018_v1  ;;  %v816_v19 = vld [vmem:[%s2636_s5 + $0x38] sm:$0xff]  ;;  %v1039_v30 = vld [vmem:[#allocation2 + $0x60] sm:$0xff] }
  0xbc   : > { %1671 = vmatprep.mubr.msk.f32.mxu0 %vm2019_vm0, %v2018_v1  ;;  %v570_v46 = vadd.f32 1.0, %v1883_v39  ;;  %1715 = vmatpush3.msra.mxu1 %v819_v16 }
  0xbd   : > { %v582_v45 = vmul.f32 %v569_v38, %v529_v41  ;;  %1896 = verf.f32 %v551_v35  ;;  %1716 = vmatprep.subr.mxu1 %v2018_v1  ;;  %v2349_v38 = vld [vmem:[%s2635_s4] ss:$0 sm:$0xff] }
  0xbe   : > { %v1885_v47 = vpop.eup %1884  ;;  %v583_v52 = vmul.f32 %v570_v46, %v530_v48  ;;  %1717 = vmatpush3.msra.mxu1 %v818_v17 }
  0xbf   : > { %1672 = vmatmul.mubr.f32.gmra.mxu0 %v580_v28  ;;  %v1887_v50 = vpop.eup %1886  ;;  %v571_v53 = vadd.f32 1.0, %v1885_v47  ;;  %1718 = vmatprep.subr.mxu1 %v2018_v1  ;;  %v1041_v28 = vld [vmem:[#allocation2 + $0x70] sm:$0xff] }
  0xc0   : > { %1674 = vmatprep.mubr.msk.f32.mxu0 %vm2019_vm0, %v2018_v1  ;;  %v572_v56 = vadd.f32 1.0, %v1887_v50  ;;  %1719 = vmatpush3.msra.mxu1 %v817_v18 }
  0xc1   : > { %v584_v55 = vmul.f32 %v571_v53, %v531_v54  ;;  %1720 = vmatprep.subr.mxu1 %v2018_v1  ;;  %1778 = vmatpush3.msra.mxu0 %v1041_v28 }
  0xc2   : > { %v1889_v57 = vpop.eup %1888  ;;  %v585_v59 = vmul.f32 %v572_v56, %v532_v58  ;;  %1721 = vmatpush3.msra.mxu1 %v816_v19  ;;  %1779 = vmatprep.subr.mxu0 %v2018_v1 }
  0xc3   : > { %1675 = vmatmul.mubr.f32.gmra.mxu0 %v581_v37  ;;  %v1891_v36 = vpop.eup %1890  ;;  %v573_v60 = vadd.f32 1.0, %v1889_v57  ;;  %1722 = vmatprep.subr.mxu1 %v2018_v1  ;;  %v1034_v37 = vld [vmem:[#allocation2 + $0x38] sm:$0xff] }
  0xc4   : > { %1677 = vmatprep.mubr.msk.f32.mxu0 %vm2019_vm0, %v2018_v1  ;;  %v574_v63 = vadd.f32 1.0, %v1891_v36  ;;  %1723 = vmatpush3.msra.mxu1 %v815_v20 }
  0xc5   : > { %v586_v62 = vmul.f32 %v573_v60, %v533_v61  ;;  %1724 = vmatprep.subr.mxu1 %v2018_v1  ;;  %1780 = vmatpush3.msra.mxu0 %v1040_v29 }
  0xc6   : > { %v1893_v0 = vpop.eup %1892  ;;  %v587_v3 = vmul.f32 %v574_v63, %v534_v2  ;;  %1725 = vmatpush3.msra.mxu1 %v814_v21  ;;  %1781 = vmatprep.subr.mxu0 %v2018_v1 }
  0xc7   : > { %1678 = vmatmul.mubr.f32.gmra.mxu0 %v582_v45  ;;  %v575_v4 = vadd.f32 1.0, %v1893_v0  ;;  %v1895_v5 = vpop.eup %1894  ;;  %1726 = vmatprep.subr.mxu1 %v2018_v1 }
  0xc8   : > { %1680 = vmatprep.mubr.msk.f32.mxu0 %vm2019_vm0, %v2018_v1  ;;  %v576_v8 = vadd.f32 1.0, %v1895_v5  ;;  %1727 = vmatpush3.msra.mxu1 %v813_v22 }
  0xc9   : > { %v588_v7 = vmul.f32 %v575_v4, %v535_v6  ;;  %1728 = vmatprep.subr.mxu1 %v2018_v1  ;;  %1782 = vmatpush3.msra.mxu0 %v1039_v30 }
  0xca   : > { %v1897_v9 = vpop.eup %1896  ;;  %v589_v11 = vmul.f32 %v576_v8, %v536_v10  ;;  %1729 = vmatpush3.msra.mxu1 %v812_v23  ;;  %1783 = vmatprep.subr.mxu0 %v2018_v1 }
  0xcb   : > { %1681 = vmatmul.mubr.f32.gmra.mxu0 %v583_v52  ;;  %v577_v12 = vadd.f32 1.0, %v1897_v9  ;;  %1730 = vmatprep.subr.mxu1 %v2018_v1 }
  0xcc   : > { %1683 = vmatprep.mubr.msk.f32.mxu0 %vm2019_vm0, %v2018_v1  ;;  %1731 = vmatpush3.msra.mxu1 %v811_v24 }
  0xcd   : > { %v590_v14 = vmul.f32 %v577_v12, %v537_v13  ;;  %1732 = vmatprep.subr.mxu1 %v2018_v1  ;;  %1784 = vmatpush3.msra.mxu0 %v1038_v31 }
  0xce   : > { %1733 = vmatpush3.msra.mxu1 %v810_v25  ;;  %1785 = vmatprep.subr.mxu0 %v2018_v1 }
  0xcf   : > { %1684 = vmatmul.mubr.f32.gmra.mxu0 %v584_v55  ;;  %1734 = vmatprep.subr.mxu1 %v2018_v1 }
  0xd0   : > { %1686 = vmatprep.mubr.msk.f32.mxu0 %vm2019_vm0, %v2018_v1  ;;  %1735 = vmatpush3.msra.mxu1 %v809_v26 }
  0xd1   : > { %1786 = vmatpush3.msra.mxu0 %v1037_v32 }
  0xd2   : > { %1787 = vmatprep.subr.mxu0 %v2018_v1 }
  0xd3   : > { %1687 = vmatmul.mubr.f32.gmra.mxu0 %v585_v59 }
  0xd4   : > { %1689 = vmatprep.mubr.msk.f32.mxu0 %vm2019_vm0, %v2018_v1  ;;  %1788 = vmatpush3.msra.mxu0 %v1036_v33 }
  0xd5   : > { %1789 = vmatprep.subr.mxu0 %v2018_v1 }
  0xd6   : > { %1790 = vmatpush3.msra.mxu0 %v1035_v34 }
  0xd7   : > { %1690 = vmatmul.mubr.f32.gmra.mxu0 %v586_v62  ;;  %1791 = vmatprep.subr.mxu0 %v2018_v1 }
  0xd8   : > { %1692 = vmatprep.mubr.msk.f32.mxu0 %vm2019_vm0, %v2018_v1  ;;  %1792 = vmatpush3.msra.mxu0 %v1034_v37 }
  0xd9   : > { %1793 = vmatprep.subr.mxu0 %v2018_v1 }
  0xdb   : > { %1693 = vmatmul.mubr.f32.gmra.mxu0 %v587_v3 }
  0xdc   : > { %1695 = vmatprep.mubr.msk.f32.mxu0 %vm2019_vm0, %v2018_v1 }
  0xdf   : > { %1696 = vmatmul.mubr.f32.gmra.mxu0 %v588_v7 }
  0xe0   : > { %1698 = vmatprep.mubr.msk.f32.mxu0 %vm2019_vm0, %v2018_v1 }
  0xe3   : > { %1699 = vmatmul.mubr.f32.gmra.mxu0 %v589_v11 }
  0xe4   : > { %1701 = vmatprep.mubr.msk.f32.mxu0 %vm2019_vm0, %v2018_v1 }
  0xe7   : > { %1702 = vmatmul.mubr.f32.gmra.mxu0 %v590_v14 }
  0xe8   : > { %1807 = vmatprep.mubr.msk.f32.mxu0 %vm2019_vm0, %v2018_v1 }
 0x177   : > { %v680_v39 = vpop.f32.mrf.mxu0 }
 0x178   : > { %v681_v40 = vadd.f32 %v2349_v38, %v680_v39 }
 0x179   : > { %v1667_v41 = vpop.f32.mrf.mxu0 }
 0x17a   : > { %v757_v42 = vmul.f32 0.70710677, %v681_v40  ;;  %v744_v57 = vmul.f32 0.5, %v681_v40 }
 0x17b   : > { %v685_v43 = vpop.f32.mrf.mxu0 }
 0x17c   : > { %1898 = verf.f32 %v757_v42  ;;  %v686_v44 = vadd.f32 %v2349_v38, %v685_v43 }
 0x17d   : > { %v1670_v45 = vpop.f32.mrf.mxu0 }
 0x17e   : > { %v758_v46 = vmul.f32 0.70710677, %v686_v44  ;;  %v745_v2 = vmul.f32 0.5, %v686_v44 }
 0x17f   : > { %v690_v47 = vpop.f32.mrf.mxu0 }
 0x180   : > { %1900 = verf.f32 %v758_v46  ;;  %v691_v48 = vadd.f32 %v2349_v38, %v690_v47 }
 0x181   : > { %v1673_v49 = vpop.f32.mrf.mxu0 }
 0x182   : > { %v759_v50 = vmul.f32 0.70710677, %v691_v48  ;;  %v746_v10 = vmul.f32 0.5, %v691_v48 }
 0x183   : > { %v695_v51 = vpop.f32.mrf.mxu0 }
 0x184   : > { %1902 = verf.f32 %v759_v50  ;;  %v696_v52 = vadd.f32 %v2349_v38, %v695_v51 }
 0x185   : > { %v1676_v53 = vpop.f32.mrf.mxu0 }
 0x186   : > { %v760_v54 = vmul.f32 0.70710677, %v696_v52  ;;  %v747_v18 = vmul.f32 0.5, %v696_v52 }
 0x187   : > { %v700_v35 = vpop.f32.mrf.mxu0 }
 0x188   : > { %1904 = verf.f32 %v760_v54  ;;  %v701_v56 = vadd.f32 %v2349_v38, %v700_v35 }
 0x189   : > { %v1899_v55 = vpop.eup %1898  ;;  %v1679_v58 = vpop.f32.mrf.mxu0 }
 0x18a   : > { %v783_v36 = vadd.f32 1.0, %v1899_v55  ;;  %v761_v59 = vmul.f32 0.70710677, %v701_v56  ;;  %v748_v26 = vmul.f32 0.5, %v701_v56 }
 0x18b   : > { %v705_v60 = vpop.f32.mrf.mxu0 }
 0x18c   : > { %v796_v61 = vmul.f32 %v783_v36, %v744_v57  ;;  %1906 = verf.f32 %v761_v59  ;;  %v706_v62 = vadd.f32 %v2349_v38, %v705_v60 }
 0x18d   : > { %v1901_v63 = vpop.eup %1900  ;;  %v1682_v0 = vpop.f32.mrf.mxu0 }
 0x18e   : > { %1737 = vmatmul.mubr.f32.vlgmr.msra.gmra.mxu1 %v796_v61  ;;  %v762_v3 = vmul.f32 0.70710677, %v706_v62  ;;  %v784_v4 = vadd.f32 1.0, %v1901_v63  ;;  %v749_v34 = vmul.f32 0.5, %v706_v62 }
 0x18f   : > { %1739 = vmatprep.mubr.msk.f32.mxu1 %vm2019_vm0, %v2018_v1  ;;  %v710_v5 = vpop.f32.mrf.mxu0 }
 0x190   : > { %1908 = verf.f32 %v762_v3  ;;  %v711_v6 = vadd.f32 %v2349_v38, %v710_v5  ;;  %v797_v7 = vmul.f32 %v784_v4, %v745_v2 }
 0x191   : > { %v1903_v8 = vpop.eup %1902  ;;  %v1685_v9 = vpop.f32.mrf.mxu0 }
 0x192   : > { %v763_v11 = vmul.f32 0.70710677, %v711_v6  ;;  %1740 = vmatmul.mubr.f32.gmra.mxu1 %v797_v7  ;;  %v785_v12 = vadd.f32 1.0, %v1903_v8  ;;  %v750_v45 = vmul.f32 0.5, %v711_v6 }
 0x193   : > { %v715_v13 = vpop.f32.mrf.mxu0  ;;  %1742 = vmatprep.mubr.msk.f32.mxu1 %vm2019_vm0, %v2018_v1 }
 0x194   : > { %1910 = verf.f32 %v763_v11  ;;  %v716_v14 = vadd.f32 %v2349_v38, %v715_v13  ;;  %v798_v15 = vmul.f32 %v785_v12, %v746_v10 }
 0x195   : > { %v1905_v16 = vpop.eup %1904  ;;  %v1688_v17 = vpop.f32.mrf.mxu0 }
 0x196   : > { %v764_v19 = vmul.f32 0.70710677, %v716_v14  ;;  %1743 = vmatmul.mubr.f32.gmra.mxu1 %v798_v15  ;;  %v786_v20 = vadd.f32 1.0, %v1905_v16  ;;  %v751_v53 = vmul.f32 0.5, %v716_v14  ;;  %v1033_v15 = vld [vmem:[#allocation2 + $0x30] sm:$0xff]  ;;  %v1032_v16 = vld [vmem:[#allocation2 + $0x28] sm:$0xff] }
 0x197   : > { %v720_v21 = vpop.f32.mrf.mxu0  ;;  %1745 = vmatprep.mubr.msk.f32.mxu1 %vm2019_vm0, %v2018_v1  ;;  %1794 = vmatpush3.msra.mxu0 %v1033_v15  ;;  %v1031_v17 = vld [vmem:[#allocation2 + $0x20] sm:$0xff] }
 0x198   : > { %1912 = verf.f32 %v764_v19  ;;  %v721_v22 = vadd.f32 %v2349_v38, %v720_v21  ;;  %v799_v23 = vmul.f32 %v786_v20, %v747_v18  ;;  %1795 = vmatprep.subr.mxu0 %v2018_v1  ;;  %v1030_v18 = vld [vmem:[#allocation2 + $0x18] sm:$0xff]  ;;  %v1029_v19 = vld [vmem:[#allocation2 + $0x10] sm:$0xff]  ;;  %v1028_v20 = vld [vmem:[#allocation2 + $0x8] sm:$0xff] }
 0x199   : > { %v1907_v24 = vpop.eup %1906  ;;  %v1691_v25 = vpop.f32.mrf.mxu0  ;;  %1796 = vmatpush3.msra.mxu0 %v1032_v16  ;;  %v1027_v21 = vld [vmem:[#allocation2] sm:$0xff] }
 0x19a   : > { %v765_v27 = vmul.f32 0.70710677, %v721_v22  ;;  %1746 = vmatmul.mubr.f32.gmra.mxu1 %v799_v23  ;;  %v787_v28 = vadd.f32 1.0, %v1907_v24  ;;  %v752_v59 = vmul.f32 0.5, %v721_v22  ;;  %1797 = vmatprep.subr.mxu0 %v2018_v1  ;;  %v1276_v22 = vld [vmem:[%s2640_s9 + $0xf8] sm:$0xff]  ;;  %v1275_v23 = vld [vmem:[%s2640_s9 + $0xf0] sm:$0xff] }
 0x19b   : > { %v725_v29 = vpop.f32.mrf.mxu0  ;;  %1748 = vmatprep.mubr.msk.f32.mxu1 %vm2019_vm0, %v2018_v1  ;;  %1798 = vmatpush3.msra.mxu0 %v1031_v17  ;;  %v1274_v24 = vld [vmem:[%s2640_s9 + $0xe8] sm:$0xff]  ;;  %v1273_v25 = vld [vmem:[%s2640_s9 + $0xe0] sm:$0xff] }
 0x19c   : > { %1914 = verf.f32 %v765_v27  ;;  %v726_v30 = vadd.f32 %v2349_v38, %v725_v29  ;;  %v800_v31 = vmul.f32 %v787_v28, %v748_v26  ;;  %1799 = vmatprep.subr.mxu0 %v2018_v1  ;;  %1289 = vmatprep.subr.mxu1 %v1276_v22  ;;  %v1272_v26 = vld [vmem:[%s2640_s9 + $0xd8] sm:$0xff]  ;;  %v1271_v27 = vld [vmem:[%s2640_s9 + $0xd0] sm:$0xff]  ;;  %v1270_v28 = vld [vmem:[%s2640_s9 + $0xc8] sm:$0xff] }
 0x19d   : > { %v1909_v32 = vpop.eup %1908  ;;  %v1694_v33 = vpop.f32.mrf.mxu0  ;;  %1800 = vmatpush3.msra.mxu0 %v1030_v18  ;;  %1290 = vmatpush1.msra.mxu1 %v1275_v23  ;;  %v1269_v29 = vld [vmem:[%s2640_s9 + $0xc0] sm:$0xff] }
 0x19e   : > { %v766_v37 = vmul.f32 0.70710677, %v726_v30  ;;  %1749 = vmatmul.mubr.f32.gmra.mxu1 %v800_v31  ;;  %v788_v39 = vadd.f32 1.0, %v1909_v32  ;;  %v753_v0 = vmul.f32 0.5, %v726_v30  ;;  %1801 = vmatprep.subr.mxu0 %v2018_v1  ;;  %v1268_v30 = vld [vmem:[%s2640_s9 + $0xb8] sm:$0xff]  ;;  %v1267_v31 = vld [vmem:[%s2640_s9 + $0xb0] sm:$0xff] }
 0x19f   : > { %v730_v40 = vpop.f32.mrf.mxu0  ;;  %1751 = vmatprep.mubr.msk.f32.mxu1 %vm2019_vm0, %v2018_v1  ;;  %1802 = vmatpush3.msra.mxu0 %v1029_v19  ;;  %v1266_v32 = vld [vmem:[%s2640_s9 + $0xa8] sm:$0xff]  ;;  %v1265_v33 = vld [vmem:[%s2640_s9 + $0xa0] sm:$0xff] }
 0x1a0   : > { %1916 = verf.f32 %v766_v37  ;;  %v731_v41 = vadd.f32 %v2349_v38, %v730_v40  ;;  %v801_v42 = vmul.f32 %v788_v39, %v749_v34  ;;  %1803 = vmatprep.subr.mxu0 %v2018_v1  ;;  %1291 = vmatprep.subr.mxu1 %v1274_v24  ;;  %v1264_v34 = vld [vmem:[%s2640_s9 + $0x98] sm:$0xff]  ;;  %v1263_v37 = vld [vmem:[%s2640_s9 + $0x90] sm:$0xff]  ;;  %v1262_v39 = vld [vmem:[%s2640_s9 + $0x88] sm:$0xff] }
 0x1a1   : > { %v1911_v43 = vpop.eup %1910  ;;  %v1697_v44 = vpop.f32.mrf.mxu0  ;;  %1804 = vmatpush3.msra.mxu0 %v1028_v20  ;;  %1292 = vmatpush1.msra.mxu1 %v1273_v25  ;;  %v1261_v40 = vld [vmem:[%s2640_s9 + $0x80] sm:$0xff] }
 0x1a2   : > { %v767_v46 = vmul.f32 0.70710677, %v731_v41  ;;  %1752 = vmatmul.mubr.f32.gmra.mxu1 %v801_v42  ;;  %v789_v47 = vadd.f32 1.0, %v1911_v43  ;;  %v754_v4 = vmul.f32 0.5, %v731_v41  ;;  %1805 = vmatprep.subr.mxu0 %v2018_v1  ;;  %v1260_v41 = vld [vmem:[%s2640_s9 + $0x78] sm:$0xff]  ;;  %v1259_v42 = vld [vmem:[%s2640_s9 + $0x70] sm:$0xff] }
 0x1a3   : > { %v735_v48 = vpop.f32.mrf.mxu0  ;;  %1754 = vmatprep.mubr.msk.f32.mxu1 %vm2019_vm0, %v2018_v1  ;;  %1806 = vmatpush3.msra.mxu0 %v1027_v21  ;;  %v2452_v43 = vld [vmem:[%s2637_s6] ss:$0 sm:$0xff] }
 0x1a4   : > { %1918 = verf.f32 %v767_v46  ;;  %v736_v49 = vadd.f32 %v2349_v38, %v735_v48  ;;  %v802_v50 = vmul.f32 %v789_v47, %v750_v45  ;;  %1293 = vmatprep.subr.mxu1 %v1272_v26 }
 0x1a5   : > { %v1913_v51 = vpop.eup %1912  ;;  %v1700_v52 = vpop.f32.mrf.mxu0  ;;  %1294 = vmatpush1.msra.mxu1 %v1271_v27 }
 0x1a6   : > { %v768_v54 = vmul.f32 0.70710677, %v736_v49  ;;  %1755 = vmatmul.mubr.f32.gmra.mxu1 %v802_v50  ;;  %v790_v35 = vadd.f32 1.0, %v1913_v51  ;;  %v755_v8 = vmul.f32 0.5, %v736_v49  ;;  %1295 = vmatprep.subr.mxu1 %v1270_v28 }
 0x1a7   : > { %v740_v55 = vpop.f32.mrf.mxu0  ;;  %1757 = vmatprep.mubr.msk.f32.mxu1 %vm2019_vm0, %v2018_v1  ;;  %1296 = vmatpush1.msra.mxu1 %v1269_v29 }
 0x1a8   : > { %1920 = verf.f32 %v768_v54  ;;  %v741_v56 = vadd.f32 %v2349_v38, %v740_v55  ;;  %v803_v57 = vmul.f32 %v790_v35, %v751_v53  ;;  %1297 = vmatprep.subr.mxu1 %v1268_v30 }
 0x1a9   : > { %v1915_v58 = vpop.eup %1914  ;;  %v1703_v36 = vpop.f32.mrf.mxu0  ;;  %1298 = vmatpush1.msra.mxu1 %v1267_v31 }
 0x1aa   : > { %v769_v60 = vmul.f32 0.70710677, %v741_v56  ;;  %1758 = vmatmul.mubr.f32.gmra.mxu1 %v803_v57  ;;  %v791_v61 = vadd.f32 1.0, %v1915_v58  ;;  %v756_v12 = vmul.f32 0.5, %v741_v56  ;;  %1299 = vmatprep.subr.mxu1 %v1266_v32 }
 0x1ab   : > { %1760 = vmatprep.mubr.msk.f32.mxu1 %vm2019_vm0, %v2018_v1  ;;  %1300 = vmatpush1.msra.mxu1 %v1265_v33 }
 0x1ac   : > { %1922 = verf.f32 %v769_v60  ;;  %v804_v62 = vmul.f32 %v791_v61, %v752_v59  ;;  %1301 = vmatprep.subr.mxu1 %v1264_v34 }
 0x1ad   : > { %v1917_v63 = vpop.eup %1916  ;;  %1302 = vmatpush1.msra.mxu1 %v1263_v37 }
 0x1ae   : > { %1761 = vmatmul.mubr.f32.gmra.mxu1 %v804_v62  ;;  %v792_v2 = vadd.f32 1.0, %v1917_v63  ;;  %1303 = vmatprep.subr.mxu1 %v1262_v39 }
 0x1af   : > { %1763 = vmatprep.mubr.msk.f32.mxu1 %vm2019_vm0, %v2018_v1  ;;  %1304 = vmatpush1.msra.mxu1 %v1261_v40 }
 0x1b0   : > { %v805_v38 = vmul.f32 %v792_v2, %v753_v0  ;;  %1305 = vmatprep.subr.mxu1 %v1260_v41 }
 0x1b1   : > { %v1919_v3 = vpop.eup %1918  ;;  %1306 = vmatpush1.msra.mxu1 %v1259_v42 }
 0x1b2   : > { %1764 = vmatmul.mubr.f32.gmra.mxu1 %v805_v38  ;;  %v793_v5 = vadd.f32 1.0, %v1919_v3 }
 0x1b3   : > { %1766 = vmatprep.mubr.msk.f32.mxu1 %vm2019_vm0, %v2018_v1 }
 0x1b4   : > { %v806_v6 = vmul.f32 %v793_v5, %v754_v4 }
 0x1b5   : > { %v1921_v7 = vpop.eup %1920 }
 0x1b6   : > { %1767 = vmatmul.mubr.f32.gmra.mxu1 %v806_v6  ;;  %v794_v9 = vadd.f32 1.0, %v1921_v7 }
 0x1b7   : > { %1769 = vmatprep.mubr.msk.f32.mxu1 %vm2019_vm0, %v2018_v1 }
 0x1b8   : > { %v807_v10 = vmul.f32 %v794_v9, %v755_v8 }
 0x1b9   : > { %v1923_v11 = vpop.eup %1922 }
 0x1ba   : > { %1770 = vmatmul.mubr.f32.gmra.mxu1 %v807_v10  ;;  %v795_v13 = vadd.f32 1.0, %v1923_v11 }
 0x1bb   : > { %1772 = vmatprep.mubr.msk.f32.mxu1 %vm2019_vm0, %v2018_v1 }
 0x1bc   : > { %v808_v14 = vmul.f32 %v795_v13, %v756_v12 }
 0x1be   : > { %1773 = vmatmul.mubr.f32.gmra.mxu1 %v808_v14 }
 0x1bf   : > { %1353 = vmatprep.mubr.f32.mxu1 %v2018_v1 }
 0x24e   : > { %v898_v44 = vpop.f32.mrf.mxu1 }
 0x24f   : > { %v899_v45 = vadd.f32 %v2452_v43, %v898_v44 }
 0x250   : > { %v1738_v46 = vpop.f32.mrf.mxu1 }
 0x251   : > { %v975_v47 = vmul.f32 0.70710677, %v899_v45  ;;  %v962_v61 = vmul.f32 0.5, %v899_v45 }
 0x252   : > { %v903_v48 = vpop.f32.mrf.mxu1 }
 0x253   : > { %1924 = verf.f32 %v975_v47  ;;  %v904_v49 = vadd.f32 %v2452_v43, %v903_v48 }
 0x254   : > { %v1741_v50 = vpop.f32.mrf.mxu1 }
 0x255   : > { %v976_v51 = vmul.f32 0.70710677, %v904_v49  ;;  %v963_v6 = vmul.f32 0.5, %v904_v49 }
 0x256   : > { %v908_v52 = vpop.f32.mrf.mxu1 }
 0x257   : > { %1926 = verf.f32 %v976_v51  ;;  %v909_v53 = vadd.f32 %v2452_v43, %v908_v52 }
 0x258   : > { %v1744_v54 = vpop.f32.mrf.mxu1 }
 0x259   : > { %v977_v35 = vmul.f32 0.70710677, %v909_v53  ;;  %v964_v14 = vmul.f32 0.5, %v909_v53 }
 0x25a   : > { %v913_v55 = vpop.f32.mrf.mxu1 }
 0x25b   : > { %1928 = verf.f32 %v977_v35  ;;  %v914_v56 = vadd.f32 %v2452_v43, %v913_v55 }
 0x25c   : > { %v1747_v57 = vpop.f32.mrf.mxu1 }
 0x25d   : > { %v978_v58 = vmul.f32 0.70710677, %v914_v56  ;;  %v965_v22 = vmul.f32 0.5, %v914_v56 }
 0x25e   : > { %v918_v36 = vpop.f32.mrf.mxu1 }
 0x25f   : > { %1930 = verf.f32 %v978_v58  ;;  %v919_v60 = vadd.f32 %v2452_v43, %v918_v36 }
 0x260   : > { %v1925_v59 = vpop.eup %1924  ;;  %v1750_v63 = vpop.f32.mrf.mxu1 }
 0x261   : > { %v1001_v62 = vadd.f32 1.0, %v1925_v59  ;;  %v979_v0 = vmul.f32 0.70710677, %v919_v60  ;;  %v966_v30 = vmul.f32 0.5, %v919_v60 }
 0x262   : > { %v923_v38 = vpop.f32.mrf.mxu1 }
 0x263   : > { %v1014_v2 = vmul.f32 %v1001_v62, %v962_v61  ;;  %1932 = verf.f32 %v979_v0  ;;  %v924_v3 = vadd.f32 %v2452_v43, %v923_v38 }
 0x264   : > { %v1927_v4 = vpop.eup %1926  ;;  %v1753_v5 = vpop.f32.mrf.mxu1 }
 0x265   : > { %1808 = vmatmul.mubr.f32.vlgmr.msra.gmra.mxu0 %v1014_v2  ;;  %v980_v7 = vmul.f32 0.70710677, %v924_v3  ;;  %v1002_v8 = vadd.f32 1.0, %v1927_v4  ;;  %v967_v41 = vmul.f32 0.5, %v924_v3 }
 0x266   : > { %1810 = vmatprep.mubr.msk.f32.mxu0 %vm2019_vm0, %v2018_v1  ;;  %v928_v9 = vpop.f32.mrf.mxu1 }
 0x267   : > { %1934 = verf.f32 %v980_v7  ;;  %v929_v10 = vadd.f32 %v2452_v43, %v928_v9  ;;  %v1015_v11 = vmul.f32 %v1002_v8, %v963_v6 }
 0x268   : > { %v1929_v12 = vpop.eup %1928  ;;  %v1756_v13 = vpop.f32.mrf.mxu1 }
 0x269   : > { %v981_v15 = vmul.f32 0.70710677, %v929_v10  ;;  %1811 = vmatmul.mubr.f32.gmra.mxu0 %v1015_v11  ;;  %v1003_v16 = vadd.f32 1.0, %v1929_v12  ;;  %v968_v50 = vmul.f32 0.5, %v929_v10 }
 0x26a   : > { %v933_v17 = vpop.f32.mrf.mxu1  ;;  %1813 = vmatprep.mubr.msk.f32.mxu0 %vm2019_vm0, %v2018_v1 }
 0x26b   : > { %1936 = verf.f32 %v981_v15  ;;  %v934_v18 = vadd.f32 %v2452_v43, %v933_v17  ;;  %v1016_v19 = vmul.f32 %v1003_v16, %v964_v14 }
 0x26c   : > { %v1931_v20 = vpop.eup %1930  ;;  %v1759_v21 = vpop.f32.mrf.mxu1 }
 0x26d   : > { %v982_v23 = vmul.f32 0.70710677, %v934_v18  ;;  %1814 = vmatmul.mubr.f32.gmra.mxu0 %v1016_v19  ;;  %v1004_v24 = vadd.f32 1.0, %v1931_v20  ;;  %v969_v57 = vmul.f32 0.5, %v934_v18  ;;  %v1258_v19 = vld [vmem:[%s2640_s9 + $0x68] sm:$0xff]  ;;  %v1257_v20 = vld [vmem:[%s2640_s9 + $0x60] sm:$0xff] }
 0x26e   : > { %v938_v25 = vpop.f32.mrf.mxu1  ;;  %1816 = vmatprep.mubr.msk.f32.mxu0 %vm2019_vm0, %v2018_v1  ;;  %1307 = vmatprep.subr.mxu1 %v1258_v19  ;;  %v1256_v21 = vld [vmem:[%s2640_s9 + $0x58] sm:$0xff] }
 0x26f   : > { %1938 = verf.f32 %v982_v23  ;;  %v939_v26 = vadd.f32 %v2452_v43, %v938_v25  ;;  %v1017_v27 = vmul.f32 %v1004_v24, %v965_v22  ;;  %1308 = vmatpush1.msra.mxu1 %v1257_v20  ;;  %v1255_v22 = vld [vmem:[%s2640_s9 + $0x50] sm:$0xff]  ;;  %v1254_v23 = vld [vmem:[%s2640_s9 + $0x48] sm:$0xff]  ;;  %v1253_v24 = vld [vmem:[%s2640_s9 + $0x40] sm:$0xff] }
 0x270   : > { %v1933_v28 = vpop.eup %1932  ;;  %v1762_v29 = vpop.f32.mrf.mxu1  ;;  %1309 = vmatprep.subr.mxu1 %v1256_v21  ;;  %v1252_v25 = vld [vmem:[%s2640_s9 + $0x38] sm:$0xff] }
 0x271   : > { %v983_v31 = vmul.f32 0.70710677, %v939_v26  ;;  %1817 = vmatmul.mubr.f32.gmra.mxu0 %v1017_v27  ;;  %v1005_v32 = vadd.f32 1.0, %v1933_v28  ;;  %v970_v0 = vmul.f32 0.5, %v939_v26  ;;  %1310 = vmatpush1.msra.mxu1 %v1255_v22  ;;  %v1251_v26 = vld [vmem:[%s2640_s9 + $0x30] sm:$0xff]  ;;  %v1250_v27 = vld [vmem:[%s2640_s9 + $0x28] sm:$0xff] }
 0x272   : > { %v943_v33 = vpop.f32.mrf.mxu1  ;;  %1819 = vmatprep.mubr.msk.f32.mxu0 %vm2019_vm0, %v2018_v1  ;;  %1311 = vmatprep.subr.mxu1 %v1254_v23  ;;  %v1249_v28 = vld [vmem:[%s2640_s9 + $0x20] sm:$0xff]  ;;  %v1248_v29 = vld [vmem:[%s2640_s9 + $0x18] sm:$0xff] }
 0x273   : > { %1940 = verf.f32 %v983_v31  ;;  %v944_v34 = vadd.f32 %v2452_v43, %v943_v33  ;;  %v1018_v37 = vmul.f32 %v1005_v32, %v966_v30  ;;  %1312 = vmatpush1.msra.mxu1 %v1253_v24  ;;  %v1247_v30 = vld [vmem:[%s2640_s9 + $0x10] sm:$0xff]  ;;  %v1246_v31 = vld [vmem:[%s2640_s9 + $0x8] sm:$0xff]  ;;  %v1245_v32 = vld [vmem:[%s2640_s9] sm:$0xff] }
 0x274   : > { %v1935_v39 = vpop.eup %1934  ;;  %v1765_v40 = vpop.f32.mrf.mxu1  ;;  %1313 = vmatprep.subr.mxu1 %v1252_v25  ;;  %v2536_v33 = vld [vmem:[%s2639_s8] ss:$0 sm:$0xff] }
 0x275   : > { %v984_v42 = vmul.f32 0.70710677, %v944_v34  ;;  %1820 = vmatmul.mubr.f32.gmra.mxu0 %v1018_v37  ;;  %v1006_v44 = vadd.f32 1.0, %v1935_v39  ;;  %v971_v5 = vmul.f32 0.5, %v944_v34  ;;  %1314 = vmatpush1.msra.mxu1 %v1251_v26 }
 0x276   : > { %v948_v45 = vpop.f32.mrf.mxu1  ;;  %1822 = vmatprep.mubr.msk.f32.mxu0 %vm2019_vm0, %v2018_v1  ;;  %1315 = vmatprep.subr.mxu1 %v1250_v27 }
 0x277   : > { %1942 = verf.f32 %v984_v42  ;;  %v949_v46 = vadd.f32 %v2452_v43, %v948_v45  ;;  %v1019_v47 = vmul.f32 %v1006_v44, %v967_v41  ;;  %1316 = vmatpush1.msra.mxu1 %v1249_v28 }
 0x278   : > { %v1937_v48 = vpop.eup %1936  ;;  %v1768_v49 = vpop.f32.mrf.mxu1  ;;  %1317 = vmatprep.subr.mxu1 %v1248_v29 }
 0x279   : > { %v985_v51 = vmul.f32 0.70710677, %v949_v46  ;;  %1823 = vmatmul.mubr.f32.gmra.mxu0 %v1019_v47  ;;  %v1007_v52 = vadd.f32 1.0, %v1937_v48  ;;  %v972_v8 = vmul.f32 0.5, %v949_v46  ;;  %1318 = vmatpush1.msra.mxu1 %v1247_v30 }
 0x27a   : > { %v953_v53 = vpop.f32.mrf.mxu1  ;;  %1825 = vmatprep.mubr.msk.f32.mxu0 %vm2019_vm0, %v2018_v1  ;;  %1319 = vmatprep.subr.mxu1 %v1246_v31 }
 0x27b   : > { %1944 = verf.f32 %v985_v51  ;;  %v954_v54 = vadd.f32 %v2452_v43, %v953_v53  ;;  %v1020_v35 = vmul.f32 %v1007_v52, %v968_v50  ;;  %1320 = vmatpush1.msra.mxu1 %v1245_v32 }
 0x27c   : > { %v1939_v55 = vpop.eup %1938  ;;  %v1771_v56 = vpop.f32.mrf.mxu1 }
 0x27d   : > { %v986_v58 = vmul.f32 0.70710677, %v954_v54  ;;  %1826 = vmatmul.mubr.f32.gmra.mxu0 %v1020_v35  ;;  %v1008_v36 = vadd.f32 1.0, %v1939_v55  ;;  %v973_v12 = vmul.f32 0.5, %v954_v54 }
 0x27e   : > { %v958_v59 = vpop.f32.mrf.mxu1  ;;  %1828 = vmatprep.mubr.msk.f32.mxu0 %vm2019_vm0, %v2018_v1 }
 0x27f   : > { %1946 = verf.f32 %v986_v58  ;;  %v959_v60 = vadd.f32 %v2452_v43, %v958_v59  ;;  %v1021_v61 = vmul.f32 %v1008_v36, %v969_v57 }
 0x280   : > { %v1941_v62 = vpop.eup %1940  ;;  %v1774_v63 = vpop.f32.mrf.mxu1 }
 0x281   : > { %v987_v2 = vmul.f32 0.70710677, %v959_v60  ;;  %1829 = vmatmul.mubr.f32.gmra.mxu0 %v1021_v61  ;;  %v1009_v38 = vadd.f32 1.0, %v1941_v62  ;;  %v974_v16 = vmul.f32 0.5, %v959_v60 }
 0x282   : > { %1831 = vmatprep.mubr.msk.f32.mxu0 %vm2019_vm0, %v2018_v1 }
 0x283   : > { %1948 = verf.f32 %v987_v2  ;;  %v1022_v3 = vmul.f32 %v1009_v38, %v970_v0 }
 0x284   : > { %v1943_v4 = vpop.eup %1942 }
 0x285   : > { %1832 = vmatmul.mubr.f32.gmra.mxu0 %v1022_v3  ;;  %v1010_v6 = vadd.f32 1.0, %v1943_v4 }
 0x286   : > { %1834 = vmatprep.mubr.msk.f32.mxu0 %vm2019_vm0, %v2018_v1 }
 0x287   : > { %v1023_v43 = vmul.f32 %v1010_v6, %v971_v5 }
 0x288   : > { %v1945_v7 = vpop.eup %1944 }
 0x289   : > { %1835 = vmatmul.mubr.f32.gmra.mxu0 %v1023_v43  ;;  %v1011_v9 = vadd.f32 1.0, %v1945_v7 }
 0x28a   : > { %1837 = vmatprep.mubr.msk.f32.mxu0 %vm2019_vm0, %v2018_v1 }
 0x28b   : > { %v1024_v10 = vmul.f32 %v1011_v9, %v972_v8 }
 0x28c   : > { %v1947_v11 = vpop.eup %1946 }
 0x28d   : > { %1838 = vmatmul.mubr.f32.gmra.mxu0 %v1024_v10  ;;  %v1012_v13 = vadd.f32 1.0, %v1947_v11 }
 0x28e   : > { %1840 = vmatprep.mubr.msk.f32.mxu0 %vm2019_vm0, %v2018_v1 }
 0x28f   : > { %v1025_v14 = vmul.f32 %v1012_v13, %v973_v12 }
 0x290   : > { %v1949_v15 = vpop.eup %1948 }
 0x291   : > { %1841 = vmatmul.mubr.f32.gmra.mxu0 %v1025_v14  ;;  %v1013_v17 = vadd.f32 1.0, %v1949_v15 }
 0x292   : > { %1843 = vmatprep.mubr.msk.f32.mxu0 %vm2019_vm0, %v2018_v1 }
 0x293   : > { %v1026_v18 = vmul.f32 %v1013_v17, %v974_v16 }
 0x295   : > { %1844 = vmatmul.mubr.f32.gmra.mxu0 %v1026_v18 }
 0x325   : > { %v1116_v34 = vpop.f32.mrf.mxu0 }
 0x326   : > { %v1117_v37 = vadd.f32 %v2536_v33, %v1116_v34 }
 0x327   : > { %v1809_v39 = vpop.f32.mrf.mxu0 }
 0x328   : > { %v1193_v40 = vmul.f32 0.70710677, %v1117_v37  ;;  %v1180_v56 = vmul.f32 0.5, %v1117_v37 }
 0x329   : > { %v1121_v41 = vpop.f32.mrf.mxu0 }
 0x32a   : > { %1950 = verf.f32 %v1193_v40  ;;  %v1122_v42 = vadd.f32 %v2536_v33, %v1121_v41 }
 0x32b   : > { %v1812_v44 = vpop.f32.mrf.mxu0 }
 0x32c   : > { %v1194_v45 = vmul.f32 0.70710677, %v1122_v42  ;;  %v1181_v0 = vmul.f32 0.5, %v1122_v42 }
 0x32d   : > { %v1126_v46 = vpop.f32.mrf.mxu0 }
 0x32e   : > { %1952 = verf.f32 %v1194_v45  ;;  %v1127_v47 = vadd.f32 %v2536_v33, %v1126_v46 }
 0x32f   : > { %v1815_v48 = vpop.f32.mrf.mxu0 }
 0x330   : > { %v1195_v49 = vmul.f32 0.70710677, %v1127_v47  ;;  %v1182_v7 = vmul.f32 0.5, %v1127_v47 }
 0x331   : > { %v1131_v50 = vpop.f32.mrf.mxu0 }
 0x332   : > { %1954 = verf.f32 %v1195_v49  ;;  %v1132_v51 = vadd.f32 %v2536_v33, %v1131_v50 }
 0x333   : > { %v1818_v52 = vpop.f32.mrf.mxu0 }
 0x334   : > { %v1196_v53 = vmul.f32 0.70710677, %v1132_v51  ;;  %v1183_v15 = vmul.f32 0.5, %v1132_v51 }
 0x335   : > { %v1136_v54 = vpop.f32.mrf.mxu0 }
 0x336   : > { %1956 = verf.f32 %v1196_v53  ;;  %v1137_v55 = vadd.f32 %v2536_v33, %v1136_v54 }
 0x337   : > { %v1951_v35 = vpop.eup %1950  ;;  %v1821_v58 = vpop.f32.mrf.mxu0 }
 0x338   : > { %v1219_v57 = vadd.f32 1.0, %v1951_v35  ;;  %v1197_v36 = vmul.f32 0.70710677, %v1137_v55  ;;  %v1184_v23 = vmul.f32 0.5, %v1137_v55 }
 0x339   : > { %v1141_v60 = vpop.f32.mrf.mxu0 }
 0x33a   : > { %v1232_v59 = vmul.f32 %v1219_v57, %v1180_v56  ;;  %1958 = verf.f32 %v1197_v36  ;;  %v1142_v61 = vadd.f32 %v2536_v33, %v1141_v60 }
 0x33b   : > { %v1953_v62 = vpop.eup %1952  ;;  %v1824_v63 = vpop.f32.mrf.mxu0 }
 0x33c   : > { %1354 = vmatmul.mubr.f32.vlgmr.msra.gmra.mxu1 %v1232_v59  ;;  %v1198_v2 = vmul.f32 0.70710677, %v1142_v61  ;;  %v1220_v38 = vadd.f32 1.0, %v1953_v62  ;;  %v1185_v31 = vmul.f32 0.5, %v1142_v61 }
 0x33d   : > { %1359 = vmatprep.mubr.f32.mxu1 %v2018_v1  ;;  %v1146_v3 = vpop.f32.mrf.mxu0 }
 0x33e   : > { %1960 = verf.f32 %v1198_v2  ;;  %v1147_v4 = vadd.f32 %v2536_v33, %v1146_v3  ;;  %v1233_v5 = vmul.f32 %v1220_v38, %v1181_v0 }
 0x33f   : > { %v1955_v6 = vpop.eup %1954  ;;  %v1827_v43 = vpop.f32.mrf.mxu0 }
 0x340   : > { %v1199_v8 = vmul.f32 0.70710677, %v1147_v4  ;;  %1360 = vmatmul.mubr.f32.gmra.mxu1 %v1233_v5  ;;  %v1221_v9 = vadd.f32 1.0, %v1955_v6  ;;  %v1186_v44 = vmul.f32 0.5, %v1147_v4 }
 0x341   : > { %v1151_v10 = vpop.f32.mrf.mxu0  ;;  %1365 = vmatprep.mubr.f32.mxu1 %v2018_v1 }
 0x342   : > { %1962 = verf.f32 %v1199_v8  ;;  %v1152_v11 = vadd.f32 %v2536_v33, %v1151_v10  ;;  %v1234_v12 = vmul.f32 %v1221_v9, %v1182_v7 }
 0x343   : > { %v1957_v13 = vpop.eup %1956  ;;  %v1830_v14 = vpop.f32.mrf.mxu0 }
 0x344   : > { %v1200_v16 = vmul.f32 0.70710677, %v1152_v11  ;;  %1366 = vmatmul.mubr.f32.gmra.mxu1 %v1234_v12  ;;  %v1222_v17 = vadd.f32 1.0, %v1957_v13  ;;  %v1187_v52 = vmul.f32 0.5, %v1152_v11  ;;  %v1279_v12 = vlaneseq }
 0x345   : > { %v1156_v18 = vpop.f32.mrf.mxu0  ;;  %1371 = vmatprep.mubr.f32.mxu1 %v2018_v1 }
 0x346   : > { %1964 = verf.f32 %v1200_v16  ;;  %v1157_v19 = vadd.f32 %v2536_v33, %v1156_v18  ;;  %v1235_v20 = vmul.f32 %v1222_v17, %v1183_v15  ;;  %v1280_v13 = vshrl.u32 %v1279_v12, 7  ;;  %v1277_v15 = vld [vmem:[%s2641_s10] sm:$0x3] }
 0x347   : > { %v1959_v21 = vpop.eup %1958  ;;  %v1833_v22 = vpop.f32.mrf.mxu0 }
 0x348   : > { %v1201_v24 = vmul.f32 0.70710677, %v1157_v19  ;;  %1372 = vmatmul.mubr.f32.gmra.mxu1 %v1235_v20  ;;  %v1223_v25 = vadd.f32 1.0, %v1959_v21  ;;  %v1188_v36 = vmul.f32 0.5, %v1157_v19  ;;  %v1281_v14 = vsub.s32 0, %v1280_v13 }
 0x349   : > { %v1161_v26 = vpop.f32.mrf.mxu0  ;;  %1377 = vmatprep.mubr.f32.mxu1 %v2018_v1  ;;  %v1285_v16 = vsub.s32 1, %v1280_v13 }
 0x34a   : > { %1966 = verf.f32 %v1201_v24  ;;  %v1162_v27 = vadd.f32 %v2536_v33, %v1161_v26  ;;  %v1236_v28 = vmul.f32 %v1223_v25, %v1184_v23  ;;  %v2567_v17 = vrot.slane %v1277_v15, %v1281_v14 }
 0x34b   : > { %v1961_v29 = vpop.eup %1960  ;;  %v1836_v30 = vpop.f32.mrf.mxu0  ;;  %v2569_v18 = vrot.slane %v1277_v15, %v1285_v16 }
 0x34c   : > { %v1202_v32 = vmul.f32 0.70710677, %v1162_v27  ;;  %1378 = vmatmul.mubr.f32.gmra.mxu1 %v1236_v28  ;;  %v1224_v34 = vadd.f32 1.0, %v1961_v29  ;;  %v1189_v63 = vmul.f32 0.5, %v1162_v27 }
 0x34d   : > { %v1166_v37 = vpop.f32.mrf.mxu0  ;;  %1383 = vmatprep.mubr.f32.mxu1 %v2018_v1 }
 0x34e   : > { %1968 = verf.f32 %v1202_v32  ;;  %v1167_v39 = vadd.f32 %v2536_v33, %v1166_v37  ;;  %v1237_v40 = vmul.f32 %v1224_v34, %v1185_v31 }
 0x34f   : > { %v1963_v41 = vpop.eup %1962  ;;  %v1839_v42 = vpop.f32.mrf.mxu0 }
 0x350   : > { %v1203_v45 = vmul.f32 0.70710677, %v1167_v39  ;;  %1384 = vmatmul.mubr.f32.gmra.mxu1 %v1237_v40  ;;  %v1225_v46 = vadd.f32 1.0, %v1963_v41 }
 0x351   : > { %v1171_v47 = vpop.f32.mrf.mxu0  ;;  %1389 = vmatprep.mubr.f32.mxu1 %v2018_v1 }
 0x352   : > { %1970 = verf.f32 %v1203_v45  ;;  %v1172_v48 = vadd.f32 %v2536_v33, %v1171_v47  ;;  %v1238_v49 = vmul.f32 %v1225_v46, %v1186_v44 }
 0x353   : > { %v1965_v50 = vpop.eup %1964  ;;  %v1842_v51 = vpop.f32.mrf.mxu0 }
 0x354   : > { %v1204_v53 = vmul.f32 0.70710677, %v1172_v48  ;;  %1390 = vmatmul.mubr.f32.gmra.mxu1 %v1238_v49  ;;  %v1226_v54 = vadd.f32 1.0, %v1965_v50  ;;  %v1191_v6 = vmul.f32 0.5, %v1172_v48 }
 0x355   : > { %v1176_v35 = vpop.f32.mrf.mxu0  ;;  %1395 = vmatprep.mubr.f32.mxu1 %v2018_v1 }
 0x356   : > { %1972 = verf.f32 %v1204_v53  ;;  %v1177_v55 = vadd.f32 %v2536_v33, %v1176_v35  ;;  %v1239_v56 = vmul.f32 %v1226_v54, %v1187_v52  ;;  %v1190_v33 = vmul.f32 0.5, %v1167_v39 }
 0x357   : > { %v1967_v57 = vpop.eup %1966  ;;  %v1845_v58 = vpop.f32.mrf.mxu0 }
 0x358   : > { %v1205_v59 = vmul.f32 0.70710677, %v1177_v55  ;;  %1396 = vmatmul.mubr.f32.gmra.mxu1 %v1239_v56  ;;  %v1227_v60 = vadd.f32 1.0, %v1967_v57  ;;  %v1192_v9 = vmul.f32 0.5, %v1177_v55 }
 0x359   : > { %1401 = vmatprep.mubr.f32.mxu1 %v2018_v1 }
 0x35a   : > { %1974 = verf.f32 %v1205_v59  ;;  %v1240_v61 = vmul.f32 %v1227_v60, %v1188_v36 }
 0x35b   : > { %v1969_v62 = vpop.eup %1968 }
 0x35c   : > { %1402 = vmatmul.mubr.f32.gmra.mxu1 %v1240_v61  ;;  %v1228_v0 = vadd.f32 1.0, %v1969_v62 }
 0x35d   : > { %1407 = vmatprep.mubr.f32.mxu1 %v2018_v1 }
 0x35e   : > { %v1241_v2 = vmul.f32 %v1228_v0, %v1189_v63 }
 0x35f   : > { %v1971_v38 = vpop.eup %1970 }
 0x360   : > { %1408 = vmatmul.mubr.f32.gmra.mxu1 %v1241_v2  ;;  %v1229_v3 = vadd.f32 1.0, %v1971_v38 }
 0x361   : > { %1413 = vmatprep.mubr.f32.mxu1 %v2018_v1 }
 0x362   : > { %v1242_v4 = vmul.f32 %v1229_v3, %v1190_v33 }
 0x363   : > { %v1973_v5 = vpop.eup %1972 }
 0x364   : > { %1414 = vmatmul.mubr.f32.gmra.mxu1 %v1242_v4  ;;  %v1230_v43 = vadd.f32 1.0, %v1973_v5 }
 0x365   : > { %1419 = vmatprep.mubr.f32.mxu1 %v2018_v1 }
 0x366   : > { %v1243_v7 = vmul.f32 %v1230_v43, %v1191_v6 }
 0x367   : > { %v1975_v8 = vpop.eup %1974 }
 0x368   : > { %1420 = vmatmul.mubr.f32.gmra.mxu1 %v1243_v7  ;;  %v1231_v10 = vadd.f32 1.0, %v1975_v8 }
 0x369   : > { %1425 = vmatprep.mubr.f32.mxu1 %v2018_v1 }
 0x36a   : > { %v1244_v11 = vmul.f32 %v1231_v10, %v1192_v9 }
 0x36c   : > { %1426 = vmatmul.mubr.f32.gmra.mxu1 %v1244_v11 }
 0x3fc   : > { %v1355_v1 = vpop.f32.mrf.mxu1 }
 0x3fd   : > { %v1356_v19 = vadd.f32 %v1355_v1, %v2567_v17 }
 0x3fe   : > { %v1357_v20 = vpop.f32.mrf.mxu1 }
 0x3ff   : > { %1432 = vst [vmem:[%s2574_s22] sm:$0xff] %v1356_v19  ;;  %v1358_v21 = vadd.f32 %v1357_v20, %v2569_v18 }
 0x400   : > { %v1361_v22 = vpop.f32.mrf.mxu1 }
 0x401   : > { %1433 = vst [vmem:[%s2574_s22 + $0x8] sm:$0xff] %v1358_v21  ;;  %v1362_v23 = vadd.f32 %v1361_v22, %v2567_v17 }
 0x402   : > { %v1363_v24 = vpop.f32.mrf.mxu1 }
 0x403   : > { %1434 = vst [vmem:[%s2574_s22 + $0x10] sm:$0xff] %v1362_v23  ;;  %v1364_v25 = vadd.f32 %v1363_v24, %v2569_v18 }
 0x404   : > { %v1367_v26 = vpop.f32.mrf.mxu1 }
 0x405   : > { %1435 = vst [vmem:[%s2574_s22 + $0x18] sm:$0xff] %v1364_v25  ;;  %v1368_v27 = vadd.f32 %v1367_v26, %v2567_v17 }
 0x406   : > { %v1369_v28 = vpop.f32.mrf.mxu1 }
 0x407   : > { %1436 = vst [vmem:[%s2574_s22 + $0x20] sm:$0xff] %v1368_v27  ;;  %v1370_v29 = vadd.f32 %v1369_v28, %v2569_v18 }
 0x408   : > { %v1373_v30 = vpop.f32.mrf.mxu1 }
 0x409   : > { %1437 = vst [vmem:[%s2574_s22 + $0x28] sm:$0xff] %v1370_v29  ;;  %v1374_v31 = vadd.f32 %v1373_v30, %v2567_v17 }
 0x40a   : > { %v1375_v32 = vpop.f32.mrf.mxu1 }
 0x40b   : > { %1438 = vst [vmem:[%s2574_s22 + $0x30] sm:$0xff] %v1374_v31  ;;  %v1376_v34 = vadd.f32 %v1375_v32, %v2569_v18 }
 0x40c   : > { %v1379_v37 = vpop.f32.mrf.mxu1 }
 0x40d   : > { %1439 = vst [vmem:[%s2574_s22 + $0x38] sm:$0xff] %v1376_v34  ;;  %v1380_v39 = vadd.f32 %v1379_v37, %v2567_v17 }
 0x40e   : > { %v1381_v40 = vpop.f32.mrf.mxu1 }
 0x40f   : > { %1440 = vst [vmem:[%s2574_s22 + $0x40] sm:$0xff] %v1380_v39  ;;  %v1382_v41 = vadd.f32 %v1381_v40, %v2569_v18 }
 0x410   : > { %v1385_v42 = vpop.f32.mrf.mxu1 }
 0x411   : > { %1441 = vst [vmem:[%s2574_s22 + $0x48] sm:$0xff] %v1382_v41  ;;  %v1386_v44 = vadd.f32 %v1385_v42, %v2567_v17 }
 0x412   : > { %v1387_v45 = vpop.f32.mrf.mxu1 }
 0x413   : > { %1442 = vst [vmem:[%s2574_s22 + $0x50] sm:$0xff] %v1386_v44  ;;  %v1388_v46 = vadd.f32 %v1387_v45, %v2569_v18 }
 0x414   : > { %v1391_v47 = vpop.f32.mrf.mxu1 }
 0x415   : > { %1443 = vst [vmem:[%s2574_s22 + $0x58] sm:$0xff] %v1388_v46  ;;  %v1392_v48 = vadd.f32 %v1391_v47, %v2567_v17 }
 0x416   : > { %v1393_v49 = vpop.f32.mrf.mxu1 }
 0x417   : > { %1444 = vst [vmem:[%s2574_s22 + $0x60] sm:$0xff] %v1392_v48  ;;  %v1394_v50 = vadd.f32 %v1393_v49, %v2569_v18 }
 0x418   : > { %v1397_v51 = vpop.f32.mrf.mxu1 }
 0x419   : > { %1445 = vst [vmem:[%s2574_s22 + $0x68] sm:$0xff] %v1394_v50  ;;  %v1398_v52 = vadd.f32 %v1397_v51, %v2567_v17 }
 0x41a   : > { %v1399_v53 = vpop.f32.mrf.mxu1 }
 0x41b   : > { %1446 = vst [vmem:[%s2574_s22 + $0x70] sm:$0xff] %v1398_v52  ;;  %v1400_v54 = vadd.f32 %v1399_v53, %v2569_v18 }
 0x41c   : > { %v1403_v35 = vpop.f32.mrf.mxu1 }
 0x41d   : > { %1447 = vst [vmem:[%s2574_s22 + $0x78] sm:$0xff] %v1400_v54  ;;  %v1404_v55 = vadd.f32 %v1403_v35, %v2567_v17 }
 0x41e   : > { %v1405_v56 = vpop.f32.mrf.mxu1 }
 0x41f   : > { %1448 = vst [vmem:[%s2574_s22 + $0x80] sm:$0xff] %v1404_v55  ;;  %v1406_v57 = vadd.f32 %v1405_v56, %v2569_v18 }
 0x420   : > { %v1409_v58 = vpop.f32.mrf.mxu1 }
 0x421   : > { %1449 = vst [vmem:[%s2574_s22 + $0x88] sm:$0xff] %v1406_v57  ;;  %v1410_v36 = vadd.f32 %v1409_v58, %v2567_v17 }
 0x422   : > { %v1411_v59 = vpop.f32.mrf.mxu1 }
 0x423   : > { %1450 = vst [vmem:[%s2574_s22 + $0x90] sm:$0xff] %v1410_v36  ;;  %v1412_v60 = vadd.f32 %v1411_v59, %v2569_v18 }
 0x424   : > { %v1415_v61 = vpop.f32.mrf.mxu1 }
 0x425   : > { %1451 = vst [vmem:[%s2574_s22 + $0x98] sm:$0xff] %v1412_v60  ;;  %v1416_v62 = vadd.f32 %v1415_v61, %v2567_v17 }
 0x426   : > { %v1417_v63 = vpop.f32.mrf.mxu1 }
 0x427   : > { %1452 = vst [vmem:[%s2574_s22 + $0xa0] sm:$0xff] %v1416_v62  ;;  %v1418_v0 = vadd.f32 %v1417_v63, %v2569_v18 }
 0x428   : > { %v1421_v2 = vpop.f32.mrf.mxu1 }
 0x429   : > { %1453 = vst [vmem:[%s2574_s22 + $0xa8] sm:$0xff] %v1418_v0  ;;  %v1422_v38 = vadd.f32 %v1421_v2, %v2567_v17 }
 0x42a   : > { %v1423_v33 = vpop.f32.mrf.mxu1 }
 0x42b   : > { %1454 = vst [vmem:[%s2574_s22 + $0xb0] sm:$0xff] %v1422_v38  ;;  %v1424_v3 = vadd.f32 %v1423_v33, %v2569_v18 }
 0x42c   : > { %v1427_v4 = vpop.f32.mrf.mxu1 }
 0x42d   : > { %1455 = vst [vmem:[%s2574_s22 + $0xb8] sm:$0xff] %v1424_v3  ;;  %v1428_v5 = vadd.f32 %v1427_v4, %v2567_v17 }
 0x42e   : > { %v1429_v6 = vpop.f32.mrf.mxu1 }
 0x42f   : > { %1456 = vst [vmem:[%s2574_s22 + $0xc0] sm:$0xff] %v1428_v5  ;;  %v1430_v43 = vadd.f32 %v1429_v6, %v2569_v18 }
 0x431   : > { %1457 = vst [vmem:[%s2574_s22 + $0xc8] sm:$0xff] %v1430_v43 }
 0x432 PF: > { %s22_s17 = sadd.s32 1, %s2012_s17  }
 0x433   : > { %p19_p1 = scmp.ge.s32.totalorder %s22_s17, 4  }
 0x435   :  { %21 = sbr.rel (!%p19_p1) target bundleno = 1 (0x1), region = 99 }
 0x43a   :  { %1482 = vsyncpa [#allocation3], 1 }
 0x43b   :  { %1484 = vsyncpa [#allocation3 + $0x1], 1 }

</bundles_post_ra>
